<compile_context>
chip_gen: v7x
topology: tpu7x:2x2x1
jax: 0.10.0
libtpu: 0.0.40
codegen_flags: <defaults>
</compile_context>

<pallas_src>
import functools

import jax
import jax.numpy as jnp
from jax.experimental import pallas as pl
from jax.experimental.pallas import tpu as pltpu


# ------------------------------ Pallas kernel ------------------------------ #

def _inception_kernel(x_ref, m25_ref, p9_ref, wA_ref, w23_ref, o_ref,
                      rhs1_ref, rhs23_ref, *, H, W, dims):
    # x_ref   : (1, Cin, HW)          flattened-spatial input for one batch element
    # m25_ref : (25, HW) f32 {1,0}    per-offset validity masks (zero padding, convs)
    # p9_ref  : (9, HW)  f32 {0,-inf} additive padding masks for the 3x3 maxpool
    # wA_ref  : (C1+C2r+C3r+C4, Cin+1)  merged 1x1 weights, bias folded as last column
    # w23_ref : (C2+C3, 9*C2r+25*C3r+1) block-diagonal 3x3+5x5 im2col weights + bias col
    # o_ref   : (1, C1+C2+C3+C4, HW)
    # rhs1_ref / rhs23_ref : VMEM scratch for the two matmul RHS operands
    Cin, C1, C2r, C2, C3r, C3, C4 = dims
    HW = H * W
    Cm = C1 + C2r + C3r            # merged-1x1 rows feeding branches 1-3
    Crd = C2r + C3r                # stacked 3x3-reduce / 5x5-reduce rows

    x = x_ref[0].astype(jnp.float32)                      # (Cin, HW)

    def shift(a, dy, dx):
        # a[:, p] <- a[:, p + dy*W + dx]; wrap-around lanes are always killed by the
        # precomputed boundary masks, so a pure lane rotation (XLU) is sufficient.
        delta = dy * W + dx
        if delta == 0:
            return a
        return pltpu.roll(a, (-delta) % HW, axis=1)

    # ---- branch4 stage 1: 3x3 max-pool (stride 1, pad 1) via 8 shifted taps ----
    pooled = x                                            # center tap is x itself
    for t in range(9):
        dy, dx = t // 3 - 1, t % 3 - 1
        if dy == 0 and dx == 0:
            continue
        pooled = jnp.maximum(pooled, shift(x, dy, dx) + p9_ref[t:t + 1, :])

    # ---- merged 1x1 matmul: [branch1 ; 3x3-reduce ; 5x5-reduce] on x and the
    #      pool-proj 1x1 on `pooled`, lane-stacked into one (Cin+1, 2*HW) RHS.
    #      Bias folded via the ones row (contraction dim pads to 128/256 anyway).
    rhs1_ref[0:Cin, 0:HW] = x
    rhs1_ref[0:Cin, HW:2 * HW] = pooled
    rhs1_ref[Cin:Cin + 1, :] = jnp.ones((1, 2 * HW), jnp.float32)
    mA = jnp.maximum(jnp.dot(wA_ref[...], rhs1_ref[...],
                             preferred_element_type=jnp.float32), 0.0)

    # branch1 / branch4: slice-store straight into the output (no channel concat).
    o_ref[0, 0:C1, :] = mA[0:C1, 0:HW].astype(o_ref.dtype)
    o_ref[0, C1 + C2 + C3:C1 + C2 + C3 + C4, :] = (
        mA[Cm:Cm + C4, HW:2 * HW].astype(o_ref.dtype))

    # ---- fused 3x3 + 5x5 im2col: stream masked taps of the stacked reduce outputs
    #      into VMEM scratch, one tap live at a time.  The 9 inner offsets are shared
    #      by the 3x3 and 5x5 convs, so each of those needs a single roll + store.
    t23 = mA[C1:C1 + Crd, 0:HW]                           # (C2r + C3r, HW)
    col = 0
    for t5 in range(25):
        dy, dx = t5 // 5 - 2, t5 % 5 - 2
        blk = shift(t23, dy, dx) * m25_ref[t5:t5 + 1, :]  # zero-padded boundary
        if abs(dy) <= 1 and abs(dx) <= 1:                 # shared 3x3 / 5x5 offset
            rhs23_ref[col:col + Crd, :] = blk
            col += Crd
        else:                                             # 5x5-only offset
            rhs23_ref[col:col + C3r, :] = blk[C2r:Crd, :]
            col += C3r
    rhs23_ref[col:col + 1, :] = jnp.ones((1, HW), jnp.float32)   # folded-bias row

    # One block-diagonal MXU pass computes branch2 and branch3 together.
    r23 = jnp.maximum(jnp.dot(w23_ref[...], rhs23_ref[...],
                              preferred_element_type=jnp.float32), 0.0)
    o_ref[0, C1:C1 + C2, :] = r23[0:C2, :].astype(o_ref.dtype)                    # branch2
    o_ref[0, C1 + C2:C1 + C2 + C3, :] = r23[C2:C2 + C3, :].astype(o_ref.dtype)    # branch3


# --------------------------- one-time prepare step --------------------------- #

def prepare_inception(params, H, W):
    """One-time packing of weights / biases / boundary masks (hoisted out of the
    jitted forward so none of this re-executes per call)."""
    (w1, b1), (w2a, b2a), (w2b, b2b) = params["b1"], params["b2a"], params["b2b"]
    (w3a, b3a), (w3b, b3b), (w4, b4) = params["b3a"], params["b3b"], params["b4"]
    Cin = w1.shape[1]
    C1, C2r, C2 = w1.shape[0], w2a.shape[0], w2b.shape[0]
    C3r, C3, C4 = w3a.shape[0], w3b.shape[0], w4.shape[0]
    HW = H * W

    # Merged 1x1 weight [branch1 ; 3x3-reduce ; 5x5-reduce ; pool-proj], bias column.
    wA = jnp.concatenate([w1.reshape(C1, Cin), w2a.reshape(C2r, Cin),
                          w3a.reshape(C3r, Cin), w4.reshape(C4, Cin)], axis=0)
    bA = jnp.concatenate([b1, b2a, b3a, b4]).reshape(-1, 1)
    wA = jnp.concatenate([wA, bA], axis=1).astype(jnp.float32)     # (Cm+C4, Cin+1)

    # Block-diagonal weight for the fused 3x3 + 5x5 im2col matmul.  Column order
    # matches the kernel's streaming order: for every 5x5 offset (row-major), first
    # the 3x3-conv channels (if the offset lies inside the inner 3x3 window), then
    # the 5x5-conv channels; last column is the folded bias.
    w2t = jnp.transpose(w2b, (0, 2, 3, 1)).reshape(C2, 9, C2r)
    w3t = jnp.transpose(w3b, (0, 2, 3, 1)).reshape(C3, 25, C3r)
    K23 = 9 * C2r + 25 * C3r + 1
    w23 = jnp.zeros((C2 + C3, K23), jnp.float32)
    col = 0
    for t5 in range(25):
        dy, dx = t5 // 5 - 2, t5 % 5 - 2
        if abs(dy) <= 1 and abs(dx) <= 1:
            t9 = (dy + 1) * 3 + (dx + 1)
            w23 = w23.at[:C2, col:col + C2r].set(w2t[:, t9, :])
            col += C2r
        w23 = w23.at[C2:, col:col + C3r].set(w3t[:, t5, :])
        col += C3r
    w23 = w23.at[:C2, col].set(b2b).at[C2:, col].set(b3b)

    # Per-offset boundary masks, computed once here instead of in-kernel VPU ops.
    flat = jnp.arange(HW, dtype=jnp.int32)
    yy, xx = flat // W, flat % W

    def valid(K):
        P = (K - 1) // 2
        rows = []
        for t in range(K * K):
            dy, dx = t // K - P, t % K - P
            rows.append((yy >= -dy) & (yy < H - dy) & (xx >= -dx) & (xx < W - dx))
        return jnp.stack(rows, axis=0)

    m25 = valid(5).astype(jnp.float32)                           # 1/0 (zero padding)
    p9 = jnp.where(valid(3), 0.0, -jnp.inf).astype(jnp.float32)  # 0/-inf (maxpool pad)

    packed = {"wA": wA, "w23": w23, "m25": m25, "p9": p9}
    dims = (Cin, C1, C2r, C2, C3r, C3, C4)
    return jax.device_put(packed), dims


# --------------------------------- wrapper ---------------------------------- #

@functools.partial(jax.jit, static_argnums=2)
def inception_forward(x_nchw, packed, dims):
    """Fused Inception forward. x_nchw: (N, Cin, H, W) -> (N, Ctot, H, W)."""
    Cin, C1, C2r, C2, C3r, C3, C4 = dims
    N, _, H, W = x_nchw.shape
    HW = H * W
    CmA = C1 + C2r + C3r + C4
    Ctot = C1 + C2 + C3 + C4
    K23 = 9 * C2r + 25 * C3r + 1

    x_flat = x_nchw.reshape(N, Cin, HW)        # free trailing-dim merge, no transpose

    flops = 2 * N * HW * (2 * CmA * (Cin + 1) + (C2 + C3) * K23)
    bytes_accessed = 4 * (N * (Cin + Ctot) * HW + packed["wA"].size +
                          packed["w23"].size + 34 * HW)

    def bcast(shape):
        return pl.BlockSpec(shape, lambda n: (0,) * len(shape))

    out = pl.pallas_call(
        functools.partial(_inception_kernel, H=H, W=W, dims=dims),
        out_shape=jax.ShapeDtypeStruct((N, Ctot, HW), x_nchw.dtype),
        grid=(N,),
        in_specs=[
            pl.BlockSpec((1, Cin, HW), lambda n: (n, 0, 0)),
            bcast((25, HW)),
            bcast((9, HW)),
            bcast((CmA, Cin + 1)),
            bcast((C2 + C3, K23)),
        ],
        out_specs=pl.BlockSpec((1, Ctot, HW), lambda n: (n, 0, 0)),
        scratch_shapes=[pltpu.VMEM((Cin + 1, 2 * HW), jnp.float32),
                        pltpu.VMEM((K23, HW), jnp.float32)],
        compiler_params=pltpu.CompilerParams(dimension_semantics=("parallel",)),
        cost_estimate=pl.CostEstimate(flops=flops, transcendentals=0,
                                      bytes_accessed=bytes_accessed),
    )(x_flat, packed["m25"], packed["p9"], packed["wA"], packed["w23"])

    return out.reshape(N, Ctot, H, W)          # free trailing-dim split


# ------------------------------ params / reference -------------------------- #

def init_inception_params(key, in_channels, ch1x1, ch3x3red, ch3x3,
                          ch5x5red, ch5x5, pool_proj):
    def conv_params(k, cout, cin, ksize):
        kw, kb = jax.random.split(k)
        w = 0.1 * jax.random.normal(kw, (cout, cin, ksize, ksize), jnp.float32)
        b = 0.1 * jax.random.normal(kb, (cout,), jnp.float32)
        return w, b
    keys = jax.random.split(key, 6)
    return {
        "b1":  conv_params(keys[0], ch1x1,    in_channels, 1),
        "b2a": conv_params(keys[1], ch3x3red, in_channels, 1),
        "b2b": conv_params(keys[2], ch3x3,    ch3x3red,    3),
        "b3a": conv_params(keys[3], ch5x5red, in_channels, 1),
        "b3b": conv_params(keys[4], ch5x5,    ch5x5red,    5),
        "b4":  conv_params(keys[5], pool_proj, in_channels, 1),
    }


def _ref_conv_relu(x, w, b, pad):
    y = jax.lax.conv_general_dilated(
        x, w, (1, 1), [(pad, pad), (pad, pad)],
        dimension_numbers=("NCHW", "OIHW", "NCHW"))
    return jax.nn.relu(y + b[None, :, None, None])


def inception_reference(x, p):
    br1 = _ref_conv_relu(x, *p["b1"], 0)
    br2 = _ref_conv_relu(_ref_conv_relu(x, *p["b2a"], 0), *p["b2b"], 1)
    br3 = _ref_conv_relu(_ref_conv_relu(x, *p["b3a"], 0), *p["b3b"], 2)
    mp = jax.lax.reduce_window(x, -jnp.inf, jax.lax.max, (1, 1, 3, 3),
                               (1, 1, 1, 1), [(0, 0), (0, 0), (1, 1), (1, 1)])
    br4 = _ref_conv_relu(mp, *p["b4"], 0)
    return jnp.concatenate([br1, br2, br3, br4], axis=1)


# ----------------------------------- main ------------------------------------ #

if __name__ == "__main__":
    key = jax.random.PRNGKey(0)
    kx, kp = jax.random.split(key)

    # Inception(in=4, ch1x1=8, ch3x3red=4, ch3x3=8, ch5x5red=4, ch5x5=8, pool_proj=8)
    N, C, H, W = 2, 4, 16, 16
    x = jax.random.normal(kx, (N, C, H, W), jnp.float32)
    params = init_inception_params(kp, C, 8, 4, 8, 4, 8, 8)

    packed, dims = prepare_inception(params, H, W)     # one-time packing (not per call)

    out = jax.block_until_ready(inception_forward(x, packed, dims))
    assert out.shape == (N, 8 + 8 + 8 + 8, H, W), out.shape

    ref = jax.block_until_ready(inception_reference(x, params))
    assert jnp.allclose(out, ref, atol=1e-4, rtol=1e-4), (
        float(jnp.max(jnp.abs(out - ref))))

    print("KERNEL_OK")
</pallas_src>

<mosaic_0001>
module attributes {stable_mosaic.version = 11 : i64} {
  func.func @_inception_kernel(%arg0: i32, %arg1: memref<1x4x256xf32, #tpu.memory_space<vmem>>, %arg2: memref<25x256xf32, #tpu.memory_space<vmem>>, %arg3: memref<9x256xf32, #tpu.memory_space<vmem>>, %arg4: memref<24x5xf32, #tpu.memory_space<vmem>>, %arg5: memref<16x137xf32, #tpu.memory_space<vmem>>, %arg6: memref<1x32x256xf32, #tpu.memory_space<vmem>>, %arg7: memref<5x512xf32, #tpu.memory_space<vmem>>, %arg8: memref<137x256xf32, #tpu.memory_space<vmem>>) attributes {dimension_semantics = [#tpu.dimension_semantics<parallel>], iteration_bounds = array<i64: 2>, scalar_prefetch = 0 : i64, scratch_operands = 2 : i64, tpu.core_type = #tpu.core_type<tc>, window_params = [{transform_indices = @transform_0, window_bounds = array<i64: 1, 4, 256>}, {pipeline_mode = #tpu.pipeline_mode<synchronous>, transform_indices = @transform_1, window_bounds = array<i64: 25, 256>}, {pipeline_mode = #tpu.pipeline_mode<synchronous>, transform_indices = @transform_2, window_bounds = array<i64: 9, 256>}, {pipeline_mode = #tpu.pipeline_mode<synchronous>, transform_indices = @transform_3, window_bounds = array<i64: 24, 5>}, {pipeline_mode = #tpu.pipeline_mode<synchronous>, transform_indices = @transform_4, window_bounds = array<i64: 16, 137>}, {transform_indices = @transform_5, window_bounds = array<i64: 1, 32, 256>}]} {
    %c0 = arith.constant 0 : index
    %c0_0 = arith.constant 0 : index
    %c0_1 = arith.constant 0 : index
    %0 = vector.load %arg1[%c0, %c0_0, %c0_1] : memref<1x4x256xf32, #tpu.memory_space<vmem>>, vector<1x4x256xf32>
    %1 = vector.shape_cast %0 : vector<1x4x256xf32> to vector<4x256xf32>
    %c17_i32 = arith.constant 17 : i32
    %2 = tpu.dynamic_rotate %1 by %c17_i32 dim 1 : vector<4x256xf32>, i32 -> vector<4x256xf32>
    %c0_2 = arith.constant 0 : index
    %c0_3 = arith.constant 0 : index
    %3 = vector.load %arg3[%c0_2, %c0_3] : memref<9x256xf32, #tpu.memory_space<vmem>>, vector<1x256xf32>
    %4 = vector.broadcast %3 : vector<1x256xf32> to vector<4x256xf32>
    %5 = arith.addf %2, %4 : vector<4x256xf32>
    %6 = arith.maximumf %1, %5 : vector<4x256xf32>
    %c16_i32 = arith.constant 16 : i32
    %7 = tpu.dynamic_rotate %1 by %c16_i32 dim 1 : vector<4x256xf32>, i32 -> vector<4x256xf32>
    %c1 = arith.constant 1 : index
    %c0_4 = arith.constant 0 : index
    %8 = vector.load %arg3[%c1, %c0_4] : memref<9x256xf32, #tpu.memory_space<vmem>>, vector<1x256xf32>
    %9 = vector.broadcast %8 : vector<1x256xf32> to vector<4x256xf32>
    %10 = arith.addf %7, %9 : vector<4x256xf32>
    %11 = arith.maximumf %6, %10 : vector<4x256xf32>
    %c15_i32 = arith.constant 15 : i32
    %12 = tpu.dynamic_rotate %1 by %c15_i32 dim 1 : vector<4x256xf32>, i32 -> vector<4x256xf32>
    %c2 = arith.constant 2 : index
    %c0_5 = arith.constant 0 : index
    %13 = vector.load %arg3[%c2, %c0_5] : memref<9x256xf32, #tpu.memory_space<vmem>>, vector<1x256xf32>
    %14 = vector.broadcast %13 : vector<1x256xf32> to vector<4x256xf32>
    %15 = arith.addf %12, %14 : vector<4x256xf32>
    %16 = arith.maximumf %11, %15 : vector<4x256xf32>
    %c1_i32 = arith.constant 1 : i32
    %17 = tpu.dynamic_rotate %1 by %c1_i32 dim 1 : vector<4x256xf32>, i32 -> vector<4x256xf32>
    %c3 = arith.constant 3 : index
    %c0_6 = arith.constant 0 : index
    %18 = vector.load %arg3[%c3, %c0_6] : memref<9x256xf32, #tpu.memory_space<vmem>>, vector<1x256xf32>
    %19 = vector.broadcast %18 : vector<1x256xf32> to vector<4x256xf32>
    %20 = arith.addf %17, %19 : vector<4x256xf32>
    %21 = arith.maximumf %16, %20 : vector<4x256xf32>
    %c255_i32 = arith.constant 255 : i32
    %22 = tpu.dynamic_rotate %1 by %c255_i32 dim 1 : vector<4x256xf32>, i32 -> vector<4x256xf32>
    %c5 = arith.constant 5 : index
    %c0_7 = arith.constant 0 : index
    %23 = vector.load %arg3[%c5, %c0_7] : memref<9x256xf32, #tpu.memory_space<vmem>>, vector<1x256xf32>
    %24 = vector.broadcast %23 : vector<1x256xf32> to vector<4x256xf32>
    %25 = arith.addf %22, %24 : vector<4x256xf32>
    %26 = arith.maximumf %21, %25 : vector<4x256xf32>
    %c241_i32 = arith.constant 241 : i32
    %27 = tpu.dynamic_rotate %1 by %c241_i32 dim 1 : vector<4x256xf32>, i32 -> vector<4x256xf32>
    %c6 = arith.constant 6 : index
    %c0_8 = arith.constant 0 : index
    %28 = vector.load %arg3[%c6, %c0_8] : memref<9x256xf32, #tpu.memory_space<vmem>>, vector<1x256xf32>
    %29 = vector.broadcast %28 : vector<1x256xf32> to vector<4x256xf32>
    %30 = arith.addf %27, %29 : vector<4x256xf32>
    %31 = arith.maximumf %26, %30 : vector<4x256xf32>
    %c240_i32 = arith.constant 240 : i32
    %32 = tpu.dynamic_rotate %1 by %c240_i32 dim 1 : vector<4x256xf32>, i32 -> vector<4x256xf32>
    %c7 = arith.constant 7 : index
    %c0_9 = arith.constant 0 : index
    %33 = vector.load %arg3[%c7, %c0_9] : memref<9x256xf32, #tpu.memory_space<vmem>>, vector<1x256xf32>
    %34 = vector.broadcast %33 : vector<1x256xf32> to vector<4x256xf32>
    %35 = arith.addf %32, %34 : vector<4x256xf32>
    %36 = arith.maximumf %31, %35 : vector<4x256xf32>
    %c239_i32 = arith.constant 239 : i32
    %37 = tpu.dynamic_rotate %1 by %c239_i32 dim 1 : vector<4x256xf32>, i32 -> vector<4x256xf32>
    %c8 = arith.constant 8 : index
    %c0_10 = arith.constant 0 : index
    %38 = vector.load %arg3[%c8, %c0_10] : memref<9x256xf32, #tpu.memory_space<vmem>>, vector<1x256xf32>
    %39 = vector.broadcast %38 : vector<1x256xf32> to vector<4x256xf32>
    %40 = arith.addf %37, %39 : vector<4x256xf32>
    %41 = arith.maximumf %36, %40 : vector<4x256xf32>
    %c0_11 = arith.constant 0 : index
    %c0_12 = arith.constant 0 : index
    %42 = vector.load %arg7[%c0_11, %c0_12] : memref<5x512xf32, #tpu.memory_space<vmem>>, vector<4x256xf32>
    tpu.vector_store %arg7[%c0_11, %c0_12], %1 {strides = array<i32>} : memref<5x512xf32, #tpu.memory_space<vmem>>, vector<4x256xf32>,
    %c0_13 = arith.constant 0 : index
    %c256 = arith.constant 256 : index
    %43 = vector.load %arg7[%c0_13, %c256] : memref<5x512xf32, #tpu.memory_space<vmem>>, vector<4x256xf32>
    tpu.vector_store %arg7[%c0_13, %c256], %41 {strides = array<i32>} : memref<5x512xf32, #tpu.memory_space<vmem>>, vector<4x256xf32>,
    %cst = arith.constant 1.000000e+00 : f32
    %44 = vector.broadcast %cst : f32 to vector<1x512xf32>
    %c4 = arith.constant 4 : index
    %c0_14 = arith.constant 0 : index
    %45 = vector.load %arg7[%c4, %c0_14] : memref<5x512xf32, #tpu.memory_space<vmem>>, vector<1x512xf32>
    tpu.vector_store %arg7[%c4, %c0_14], %44 {strides = array<i32>} : memref<5x512xf32, #tpu.memory_space<vmem>>, vector<1x512xf32>,
    %c0_15 = arith.constant 0 : index
    %c0_16 = arith.constant 0 : index
    %46 = vector.load %arg4[%c0_15, %c0_16] : memref<24x5xf32, #tpu.memory_space<vmem>>, vector<24x5xf32>
    %c0_17 = arith.constant 0 : index
    %c0_18 = arith.constant 0 : index
    %47 = vector.load %arg7[%c0_17, %c0_18] : memref<5x512xf32, #tpu.memory_space<vmem>>, vector<5x512xf32>
    %cst_19 = arith.constant dense<0.000000e+00> : vector<24x512xf32>
    %48 = tpu.matmul %46, %47, %cst_19 {dimension_numbers = #tpu.dot_dimension_numbers<[1], [0], [0], [1], [0, 0, 1, 1], [], []>} : vector<24x5xf32>, vector<5x512xf32>, vector<24x512xf32> -> vector<24x512xf32>
    %cst_20 = arith.constant 0.000000e+00 : f32
    %49 = vector.broadcast %cst_20 : f32 to vector<24x512xf32>
    %50 = arith.maximumf %48, %49 : vector<24x512xf32>
    %51 = vector.extract_strided_slice %50 {offsets = [0, 0], sizes = [8, 256], strides = [1, 1]} : vector<24x512xf32> to vector<8x256xf32>
    %c0_21 = arith.constant 0 : index
    %c0_22 = arith.constant 0 : index
    %c0_23 = arith.constant 0 : index
    %52 = vector.load %arg6[%c0_21, %c0_22, %c0_23] : memref<1x32x256xf32, #tpu.memory_space<vmem>>, vector<1x8x256xf32>
    %53 = vector.shape_cast %52 : vector<1x8x256xf32> to vector<8x256xf32>
    %54 = vector.shape_cast %51 : vector<8x256xf32> to vector<1x8x256xf32>
    tpu.vector_store %arg6[%c0_21, %c0_22, %c0_23], %54 {strides = array<i32>} : memref<1x32x256xf32, #tpu.memory_space<vmem>>, vector<1x8x256xf32>,
    %55 = vector.extract_strided_slice %50 {offsets = [16, 256], sizes = [8, 256], strides = [1, 1]} : vector<24x512xf32> to vector<8x256xf32>
    %c0_24 = arith.constant 0 : index
    %c24 = arith.constant 24 : index
    %c0_25 = arith.constant 0 : index
    %56 = vector.load %arg6[%c0_24, %c24, %c0_25] : memref<1x32x256xf32, #tpu.memory_space<vmem>>, vector<1x8x256xf32>
    %57 = vector.shape_cast %56 : vector<1x8x256xf32> to vector<8x256xf32>
    %58 = vector.shape_cast %55 : vector<8x256xf32> to vector<1x8x256xf32>
    tpu.vector_store %arg6[%c0_24, %c24, %c0_25], %58 {strides = array<i32>} : memref<1x32x256xf32, #tpu.memory_space<vmem>>, vector<1x8x256xf32>,
    %59 = vector.extract_strided_slice %50 {offsets = [8, 0], sizes = [8, 256], strides = [1, 1]} : vector<24x512xf32> to vector<8x256xf32>
    %c34_i32 = arith.constant 34 : i32
    %60 = tpu.dynamic_rotate %59 by %c34_i32 dim 1 : vector<8x256xf32>, i32 -> vector<8x256xf32>
    %c0_26 = arith.constant 0 : index
    %c0_27 = arith.constant 0 : index
    %61 = vector.load %arg2[%c0_26, %c0_27] : memref<25x256xf32, #tpu.memory_space<vmem>>, vector<1x256xf32>
    %62 = vector.broadcast %61 : vector<1x256xf32> to vector<8x256xf32>
    %63 = arith.mulf %60, %62 : vector<8x256xf32>
    %64 = vector.extract_strided_slice %63 {offsets = [4, 0], sizes = [4, 256], strides = [1, 1]} : vector<8x256xf32> to vector<4x256xf32>
    %c0_28 = arith.constant 0 : index
    %c0_29 = arith.constant 0 : index
    %65 = vector.load %arg8[%c0_28, %c0_29] : memref<137x256xf32, #tpu.memory_space<vmem>>, vector<4x256xf32>
    tpu.vector_store %arg8[%c0_28, %c0_29], %64 {strides = array<i32>} : memref<137x256xf32, #tpu.memory_space<vmem>>, vector<4x256xf32>,
    %c33_i32 = arith.constant 33 : i32
    %66 = tpu.dynamic_rotate %59 by %c33_i32 dim 1 : vector<8x256xf32>, i32 -> vector<8x256xf32>
    %c1_30 = arith.constant 1 : index
    %c0_31 = arith.constant 0 : index
    %67 = vector.load %arg2[%c1_30, %c0_31] : memref<25x256xf32, #tpu.memory_space<vmem>>, vector<1x256xf32>
    %68 = vector.broadcast %67 : vector<1x256xf32> to vector<8x256xf32>
    %69 = arith.mulf %66, %68 : vector<8x256xf32>
    %70 = vector.extract_strided_slice %69 {offsets = [4, 0], sizes = [4, 256], strides = [1, 1]} : vector<8x256xf32> to vector<4x256xf32>
    %c4_32 = arith.constant 4 : index
    %c0_33 = arith.constant 0 : index
    %71 = vector.load %arg8[%c4_32, %c0_33] : memref<137x256xf32, #tpu.memory_space<vmem>>, vector<4x256xf32>
    tpu.vector_store %arg8[%c4_32, %c0_33], %70 {strides = array<i32>} : memref<137x256xf32, #tpu.memory_space<vmem>>, vector<4x256xf32>,
    %c32_i32 = arith.constant 32 : i32
    %72 = tpu.dynamic_rotate %59 by %c32_i32 dim 1 : vector<8x256xf32>, i32 -> vector<8x256xf32>
    %c2_34 = arith.constant 2 : index
    %c0_35 = arith.constant 0 : index
    %73 = vector.load %arg2[%c2_34, %c0_35] : memref<25x256xf32, #tpu.memory_space<vmem>>, vector<1x256xf32>
    %74 = vector.broadcast %73 : vector<1x256xf32> to vector<8x256xf32>
    %75 = arith.mulf %72, %74 : vector<8x256xf32>
    %76 = vector.extract_strided_slice %75 {offsets = [4, 0], sizes = [4, 256], strides = [1, 1]} : vector<8x256xf32> to vector<4x256xf32>
    %c8_36 = arith.constant 8 : index
    %c0_37 = arith.constant 0 : index
    %77 = vector.load %arg8[%c8_36, %c0_37] : memref<137x256xf32, #tpu.memory_space<vmem>>, vector<4x256xf32>
    tpu.vector_store %arg8[%c8_36, %c0_37], %76 {strides = array<i32>} : memref<137x256xf32, #tpu.memory_space<vmem>>, vector<4x256xf32>,
    %c31_i32 = arith.constant 31 : i32
    %78 = tpu.dynamic_rotate %59 by %c31_i32 dim 1 : vector<8x256xf32>, i32 -> vector<8x256xf32>
    %c3_38 = arith.constant 3 : index
    %c0_39 = arith.constant 0 : index
    %79 = vector.load %arg2[%c3_38, %c0_39] : memref<25x256xf32, #tpu.memory_space<vmem>>, vector<1x256xf32>
    %80 = vector.broadcast %79 : vector<1x256xf32> to vector<8x256xf32>
    %81 = arith.mulf %78, %80 : vector<8x256xf32>
    %82 = vector.extract_strided_slice %81 {offsets = [4, 0], sizes = [4, 256], strides = [1, 1]} : vector<8x256xf32> to vector<4x256xf32>
    %c12 = arith.constant 12 : index
    %c0_40 = arith.constant 0 : index
    %83 = vector.load %arg8[%c12, %c0_40] : memref<137x256xf32, #tpu.memory_space<vmem>>, vector<4x256xf32>
    tpu.vector_store %arg8[%c12, %c0_40], %82 {strides = array<i32>} : memref<137x256xf32, #tpu.memory_space<vmem>>, vector<4x256xf32>,
    %c30_i32 = arith.constant 30 : i32
    %84 = tpu.dynamic_rotate %59 by %c30_i32 dim 1 : vector<8x256xf32>, i32 -> vector<8x256xf32>
    %c4_41 = arith.constant 4 : index
    %c0_42 = arith.constant 0 : index
    %85 = vector.load %arg2[%c4_41, %c0_42] : memref<25x256xf32, #tpu.memory_space<vmem>>, vector<1x256xf32>
    %86 = vector.broadcast %85 : vector<1x256xf32> to vector<8x256xf32>
    %87 = arith.mulf %84, %86 : vector<8x256xf32>
    %88 = vector.extract_strided_slice %87 {offsets = [4, 0], sizes = [4, 256], strides = [1, 1]} : vector<8x256xf32> to vector<4x256xf32>
    %c16 = arith.constant 16 : index
    %c0_43 = arith.constant 0 : index
    %89 = vector.load %arg8[%c16, %c0_43] : memref<137x256xf32, #tpu.memory_space<vmem>>, vector<4x256xf32>
    tpu.vector_store %arg8[%c16, %c0_43], %88 {strides = array<i32>} : memref<137x256xf32, #tpu.memory_space<vmem>>, vector<4x256xf32>,
    %c18_i32 = arith.constant 18 : i32
    %90 = tpu.dynamic_rotate %59 by %c18_i32 dim 1 : vector<8x256xf32>, i32 -> vector<8x256xf32>
    %c5_44 = arith.constant 5 : index
    %c0_45 = arith.constant 0 : index
    %91 = vector.load %arg2[%c5_44, %c0_45] : memref<25x256xf32, #tpu.memory_space<vmem>>, vector<1x256xf32>
    %92 = vector.broadcast %91 : vector<1x256xf32> to vector<8x256xf32>
    %93 = arith.mulf %90, %92 : vector<8x256xf32>
    %94 = vector.extract_strided_slice %93 {offsets = [4, 0], sizes = [4, 256], strides = [1, 1]} : vector<8x256xf32> to vector<4x256xf32>
    %c20 = arith.constant 20 : index
    %c0_46 = arith.constant 0 : index
    %95 = vector.load %arg8[%c20, %c0_46] : memref<137x256xf32, #tpu.memory_space<vmem>>, vector<4x256xf32>
    tpu.vector_store %arg8[%c20, %c0_46], %94 {strides = array<i32>} : memref<137x256xf32, #tpu.memory_space<vmem>>, vector<4x256xf32>,
    %c17_i32_47 = arith.constant 17 : i32
    %96 = tpu.dynamic_rotate %59 by %c17_i32_47 dim 1 : vector<8x256xf32>, i32 -> vector<8x256xf32>
    %c6_48 = arith.constant 6 : index
    %c0_49 = arith.constant 0 : index
    %97 = vector.load %arg2[%c6_48, %c0_49] : memref<25x256xf32, #tpu.memory_space<vmem>>, vector<1x256xf32>
    %98 = vector.broadcast %97 : vector<1x256xf32> to vector<8x256xf32>
    %99 = arith.mulf %96, %98 : vector<8x256xf32>
    %c24_50 = arith.constant 24 : index
    %c0_51 = arith.constant 0 : index
    %100 = vector.load %arg8[%c24_50, %c0_51] : memref<137x256xf32, #tpu.memory_space<vmem>>, vector<8x256xf32>
    tpu.vector_store %arg8[%c24_50, %c0_51], %99 {strides = array<i32>} : memref<137x256xf32, #tpu.memory_space<vmem>>, vector<8x256xf32>,
    %c16_i32_52 = arith.constant 16 : i32
    %101 = tpu.dynamic_rotate %59 by %c16_i32_52 dim 1 : vector<8x256xf32>, i32 -> vector<8x256xf32>
    %c7_53 = arith.constant 7 : index
    %c0_54 = arith.constant 0 : index
    %102 = vector.load %arg2[%c7_53, %c0_54] : memref<25x256xf32, #tpu.memory_space<vmem>>, vector<1x256xf32>
    %103 = vector.broadcast %102 : vector<1x256xf32> to vector<8x256xf32>
    %104 = arith.mulf %101, %103 : vector<8x256xf32>
    %c32 = arith.constant 32 : index
    %c0_55 = arith.constant 0 : index
    %105 = vector.load %arg8[%c32, %c0_55] : memref<137x256xf32, #tpu.memory_space<vmem>>, vector<8x256xf32>
    tpu.vector_store %arg8[%c32, %c0_55], %104 {strides = array<i32>} : memref<137x256xf32, #tpu.memory_space<vmem>>, vector<8x256xf32>,
    %c15_i32_56 = arith.constant 15 : i32
    %106 = tpu.dynamic_rotate %59 by %c15_i32_56 dim 1 : vector<8x256xf32>, i32 -> vector<8x256xf32>
    %c8_57 = arith.constant 8 : index
    %c0_58 = arith.constant 0 : index
    %107 = vector.load %arg2[%c8_57, %c0_58] : memref<25x256xf32, #tpu.memory_space<vmem>>, vector<1x256xf32>
    %108 = vector.broadcast %107 : vector<1x256xf32> to vector<8x256xf32>
    %109 = arith.mulf %106, %108 : vector<8x256xf32>
    %c40 = arith.constant 40 : index
    %c0_59 = arith.constant 0 : index
    %110 = vector.load %arg8[%c40, %c0_59] : memref<137x256xf32, #tpu.memory_space<vmem>>, vector<8x256xf32>
    tpu.vector_store %arg8[%c40, %c0_59], %109 {strides = array<i32>} : memref<137x256xf32, #tpu.memory_space<vmem>>, vector<8x256xf32>,
    %c14_i32 = arith.constant 14 : i32
    %111 = tpu.dynamic_rotate %59 by %c14_i32 dim 1 : vector<8x256xf32>, i32 -> vector<8x256xf32>
    %c9 = arith.constant 9 : index
    %c0_60 = arith.constant 0 : index
    %112 = vector.load %arg2[%c9, %c0_60] : memref<25x256xf32, #tpu.memory_space<vmem>>, vector<1x256xf32>
    %113 = vector.broadcast %112 : vector<1x256xf32> to vector<8x256xf32>
    %114 = arith.mulf %111, %113 : vector<8x256xf32>
    %115 = vector.extract_strided_slice %114 {offsets = [4, 0], sizes = [4, 256], strides = [1, 1]} : vector<8x256xf32> to vector<4x256xf32>
    %c48 = arith.constant 48 : index
    %c0_61 = arith.constant 0 : index
    %116 = vector.load %arg8[%c48, %c0_61] : memref<137x256xf32, #tpu.memory_space<vmem>>, vector<4x256xf32>
    tpu.vector_store %arg8[%c48, %c0_61], %115 {strides = array<i32>} : memref<137x256xf32, #tpu.memory_space<vmem>>, vector<4x256xf32>,
    %c2_i32 = arith.constant 2 : i32
    %117 = tpu.dynamic_rotate %59 by %c2_i32 dim 1 : vector<8x256xf32>, i32 -> vector<8x256xf32>
    %c10 = arith.constant 10 : index
    %c0_62 = arith.constant 0 : index
    %118 = vector.load %arg2[%c10, %c0_62] : memref<25x256xf32, #tpu.memory_space<vmem>>, vector<1x256xf32>
    %119 = vector.broadcast %118 : vector<1x256xf32> to vector<8x256xf32>
    %120 = arith.mulf %117, %119 : vector<8x256xf32>
    %121 = vector.extract_strided_slice %120 {offsets = [4, 0], sizes = [4, 256], strides = [1, 1]} : vector<8x256xf32> to vector<4x256xf32>
    %c52 = arith.constant 52 : index
    %c0_63 = arith.constant 0 : index
    %122 = vector.load %arg8[%c52, %c0_63] : memref<137x256xf32, #tpu.memory_space<vmem>>, vector<4x256xf32>
    tpu.vector_store %arg8[%c52, %c0_63], %121 {strides = array<i32>} : memref<137x256xf32, #tpu.memory_space<vmem>>, vector<4x256xf32>,
    %c1_i32_64 = arith.constant 1 : i32
    %123 = tpu.dynamic_rotate %59 by %c1_i32_64 dim 1 : vector<8x256xf32>, i32 -> vector<8x256xf32>
    %c11 = arith.constant 11 : index
    %c0_65 = arith.constant 0 : index
    %124 = vector.load %arg2[%c11, %c0_65] : memref<25x256xf32, #tpu.memory_space<vmem>>, vector<1x256xf32>
    %125 = vector.broadcast %124 : vector<1x256xf32> to vector<8x256xf32>
    %126 = arith.mulf %123, %125 : vector<8x256xf32>
    %c56 = arith.constant 56 : index
    %c0_66 = arith.constant 0 : index
    %127 = vector.load %arg8[%c56, %c0_66] : memref<137x256xf32, #tpu.memory_space<vmem>>, vector<8x256xf32>
    tpu.vector_store %arg8[%c56, %c0_66], %126 {strides = array<i32>} : memref<137x256xf32, #tpu.memory_space<vmem>>, vector<8x256xf32>,
    %c12_67 = arith.constant 12 : index
    %c0_68 = arith.constant 0 : index
    %128 = vector.load %arg2[%c12_67, %c0_68] : memref<25x256xf32, #tpu.memory_space<vmem>>, vector<1x256xf32>
    %129 = vector.broadcast %128 : vector<1x256xf32> to vector<8x256xf32>
    %130 = arith.mulf %59, %129 : vector<8x256xf32>
    %c64 = arith.constant 64 : index
    %c0_69 = arith.constant 0 : index
    %131 = vector.load %arg8[%c64, %c0_69] : memref<137x256xf32, #tpu.memory_space<vmem>>, vector<8x256xf32>
    tpu.vector_store %arg8[%c64, %c0_69], %130 {strides = array<i32>} : memref<137x256xf32, #tpu.memory_space<vmem>>, vector<8x256xf32>,
    %c255_i32_70 = arith.constant 255 : i32
    %132 = tpu.dynamic_rotate %59 by %c255_i32_70 dim 1 : vector<8x256xf32>, i32 -> vector<8x256xf32>
    %c13 = arith.constant 13 : index
    %c0_71 = arith.constant 0 : index
    %133 = vector.load %arg2[%c13, %c0_71] : memref<25x256xf32, #tpu.memory_space<vmem>>, vector<1x256xf32>
    %134 = vector.broadcast %133 : vector<1x256xf32> to vector<8x256xf32>
    %135 = arith.mulf %132, %134 : vector<8x256xf32>
    %c72 = arith.constant 72 : index
    %c0_72 = arith.constant 0 : index
    %136 = vector.load %arg8[%c72, %c0_72] : memref<137x256xf32, #tpu.memory_space<vmem>>, vector<8x256xf32>
    tpu.vector_store %arg8[%c72, %c0_72], %135 {strides = array<i32>} : memref<137x256xf32, #tpu.memory_space<vmem>>, vector<8x256xf32>,
    %c254_i32 = arith.constant 254 : i32
    %137 = tpu.dynamic_rotate %59 by %c254_i32 dim 1 : vector<8x256xf32>, i32 -> vector<8x256xf32>
    %c14 = arith.constant 14 : index
    %c0_73 = arith.constant 0 : index
    %138 = vector.load %arg2[%c14, %c0_73] : memref<25x256xf32, #tpu.memory_space<vmem>>, vector<1x256xf32>
    %139 = vector.broadcast %138 : vector<1x256xf32> to vector<8x256xf32>
    %140 = arith.mulf %137, %139 : vector<8x256xf32>
    %141 = vector.extract_strided_slice %140 {offsets = [4, 0], sizes = [4, 256], strides = [1, 1]} : vector<8x256xf32> to vector<4x256xf32>
    %c80 = arith.constant 80 : index
    %c0_74 = arith.constant 0 : index
    %142 = vector.load %arg8[%c80, %c0_74] : memref<137x256xf32, #tpu.memory_space<vmem>>, vector<4x256xf32>
    tpu.vector_store %arg8[%c80, %c0_74], %141 {strides = array<i32>} : memref<137x256xf32, #tpu.memory_space<vmem>>, vector<4x256xf32>,
    %c242_i32 = arith.constant 242 : i32
    %143 = tpu.dynamic_rotate %59 by %c242_i32 dim 1 : vector<8x256xf32>, i32 -> vector<8x256xf32>
    %c15 = arith.constant 15 : index
    %c0_75 = arith.constant 0 : index
    %144 = vector.load %arg2[%c15, %c0_75] : memref<25x256xf32, #tpu.memory_space<vmem>>, vector<1x256xf32>
    %145 = vector.broadcast %144 : vector<1x256xf32> to vector<8x256xf32>
    %146 = arith.mulf %143, %145 : vector<8x256xf32>
    %147 = vector.extract_strided_slice %146 {offsets = [4, 0], sizes = [4, 256], strides = [1, 1]} : vector<8x256xf32> to vector<4x256xf32>
    %c84 = arith.constant 84 : index
    %c0_76 = arith.constant 0 : index
    %148 = vector.load %arg8[%c84, %c0_76] : memref<137x256xf32, #tpu.memory_space<vmem>>, vector<4x256xf32>
    tpu.vector_store %arg8[%c84, %c0_76], %147 {strides = array<i32>} : memref<137x256xf32, #tpu.memory_space<vmem>>, vector<4x256xf32>,
    %c241_i32_77 = arith.constant 241 : i32
    %149 = tpu.dynamic_rotate %59 by %c241_i32_77 dim 1 : vector<8x256xf32>, i32 -> vector<8x256xf32>
    %c16_78 = arith.constant 16 : index
    %c0_79 = arith.constant 0 : index
    %150 = vector.load %arg2[%c16_78, %c0_79] : memref<25x256xf32, #tpu.memory_space<vmem>>, vector<1x256xf32>
    %151 = vector.broadcast %150 : vector<1x256xf32> to vector<8x256xf32>
    %152 = arith.mulf %149, %151 : vector<8x256xf32>
    %c88 = arith.constant 88 : index
    %c0_80 = arith.constant 0 : index
    %153 = vector.load %arg8[%c88, %c0_80] : memref<137x256xf32, #tpu.memory_space<vmem>>, vector<8x256xf32>
    tpu.vector_store %arg8[%c88, %c0_80], %152 {strides = array<i32>} : memref<137x256xf32, #tpu.memory_space<vmem>>, vector<8x256xf32>,
    %c240_i32_81 = arith.constant 240 : i32
    %154 = tpu.dynamic_rotate %59 by %c240_i32_81 dim 1 : vector<8x256xf32>, i32 -> vector<8x256xf32>
    %c17 = arith.constant 17 : index
    %c0_82 = arith.constant 0 : index
    %155 = vector.load %arg2[%c17, %c0_82] : memref<25x256xf32, #tpu.memory_space<vmem>>, vector<1x256xf32>
    %156 = vector.broadcast %155 : vector<1x256xf32> to vector<8x256xf32>
    %157 = arith.mulf %154, %156 : vector<8x256xf32>
    %c96 = arith.constant 96 : index
    %c0_83 = arith.constant 0 : index
    %158 = vector.load %arg8[%c96, %c0_83] : memref<137x256xf32, #tpu.memory_space<vmem>>, vector<8x256xf32>
    tpu.vector_store %arg8[%c96, %c0_83], %157 {strides = array<i32>} : memref<137x256xf32, #tpu.memory_space<vmem>>, vector<8x256xf32>,
    %c239_i32_84 = arith.constant 239 : i32
    %159 = tpu.dynamic_rotate %59 by %c239_i32_84 dim 1 : vector<8x256xf32>, i32 -> vector<8x256xf32>
    %c18 = arith.constant 18 : index
    %c0_85 = arith.constant 0 : index
    %160 = vector.load %arg2[%c18, %c0_85] : memref<25x256xf32, #tpu.memory_space<vmem>>, vector<1x256xf32>
    %161 = vector.broadcast %160 : vector<1x256xf32> to vector<8x256xf32>
    %162 = arith.mulf %159, %161 : vector<8x256xf32>
    %c104 = arith.constant 104 : index
    %c0_86 = arith.constant 0 : index
    %163 = vector.load %arg8[%c104, %c0_86] : memref<137x256xf32, #tpu.memory_space<vmem>>, vector<8x256xf32>
    tpu.vector_store %arg8[%c104, %c0_86], %162 {strides = array<i32>} : memref<137x256xf32, #tpu.memory_space<vmem>>, vector<8x256xf32>,
    %c238_i32 = arith.constant 238 : i32
    %164 = tpu.dynamic_rotate %59 by %c238_i32 dim 1 : vector<8x256xf32>, i32 -> vector<8x256xf32>
    %c19 = arith.constant 19 : index
    %c0_87 = arith.constant 0 : index
    %165 = vector.load %arg2[%c19, %c0_87] : memref<25x256xf32, #tpu.memory_space<vmem>>, vector<1x256xf32>
    %166 = vector.broadcast %165 : vector<1x256xf32> to vector<8x256xf32>
    %167 = arith.mulf %164, %166 : vector<8x256xf32>
    %168 = vector.extract_strided_slice %167 {offsets = [4, 0], sizes = [4, 256], strides = [1, 1]} : vector<8x256xf32> to vector<4x256xf32>
    %c112 = arith.constant 112 : index
    %c0_88 = arith.constant 0 : index
    %169 = vector.load %arg8[%c112, %c0_88] : memref<137x256xf32, #tpu.memory_space<vmem>>, vector<4x256xf32>
    tpu.vector_store %arg8[%c112, %c0_88], %168 {strides = array<i32>} : memref<137x256xf32, #tpu.memory_space<vmem>>, vector<4x256xf32>,
    %c226_i32 = arith.constant 226 : i32
    %170 = tpu.dynamic_rotate %59 by %c226_i32 dim 1 : vector<8x256xf32>, i32 -> vector<8x256xf32>
    %c20_89 = arith.constant 20 : index
    %c0_90 = arith.constant 0 : index
    %171 = vector.load %arg2[%c20_89, %c0_90] : memref<25x256xf32, #tpu.memory_space<vmem>>, vector<1x256xf32>
    %172 = vector.broadcast %171 : vector<1x256xf32> to vector<8x256xf32>
    %173 = arith.mulf %170, %172 : vector<8x256xf32>
    %174 = vector.extract_strided_slice %173 {offsets = [4, 0], sizes = [4, 256], strides = [1, 1]} : vector<8x256xf32> to vector<4x256xf32>
    %c116 = arith.constant 116 : index
    %c0_91 = arith.constant 0 : index
    %175 = vector.load %arg8[%c116, %c0_91] : memref<137x256xf32, #tpu.memory_space<vmem>>, vector<4x256xf32>
    tpu.vector_store %arg8[%c116, %c0_91], %174 {strides = array<i32>} : memref<137x256xf32, #tpu.memory_space<vmem>>, vector<4x256xf32>,
    %c225_i32 = arith.constant 225 : i32
    %176 = tpu.dynamic_rotate %59 by %c225_i32 dim 1 : vector<8x256xf32>, i32 -> vector<8x256xf32>
    %c21 = arith.constant 21 : index
    %c0_92 = arith.constant 0 : index
    %177 = vector.load %arg2[%c21, %c0_92] : memref<25x256xf32, #tpu.memory_space<vmem>>, vector<1x256xf32>
    %178 = vector.broadcast %177 : vector<1x256xf32> to vector<8x256xf32>
    %179 = arith.mulf %176, %178 : vector<8x256xf32>
    %180 = vector.extract_strided_slice %179 {offsets = [4, 0], sizes = [4, 256], strides = [1, 1]} : vector<8x256xf32> to vector<4x256xf32>
    %c120 = arith.constant 120 : index
    %c0_93 = arith.constant 0 : index
    %181 = vector.load %arg8[%c120, %c0_93] : memref<137x256xf32, #tpu.memory_space<vmem>>, vector<4x256xf32>
    tpu.vector_store %arg8[%c120, %c0_93], %180 {strides = array<i32>} : memref<137x256xf32, #tpu.memory_space<vmem>>, vector<4x256xf32>,
    %c224_i32 = arith.constant 224 : i32
    %182 = tpu.dynamic_rotate %59 by %c224_i32 dim 1 : vector<8x256xf32>, i32 -> vector<8x256xf32>
    %c22 = arith.constant 22 : index
    %c0_94 = arith.constant 0 : index
    %183 = vector.load %arg2[%c22, %c0_94] : memref<25x256xf32, #tpu.memory_space<vmem>>, vector<1x256xf32>
    %184 = vector.broadcast %183 : vector<1x256xf32> to vector<8x256xf32>
    %185 = arith.mulf %182, %184 : vector<8x256xf32>
    %186 = vector.extract_strided_slice %185 {offsets = [4, 0], sizes = [4, 256], strides = [1, 1]} : vector<8x256xf32> to vector<4x256xf32>
    %c124 = arith.constant 124 : index
    %c0_95 = arith.constant 0 : index
    %187 = vector.load %arg8[%c124, %c0_95] : memref<137x256xf32, #tpu.memory_space<vmem>>, vector<4x256xf32>
    tpu.vector_store %arg8[%c124, %c0_95], %186 {strides = array<i32>} : memref<137x256xf32, #tpu.memory_space<vmem>>, vector<4x256xf32>,
    %c223_i32 = arith.constant 223 : i32
    %188 = tpu.dynamic_rotate %59 by %c223_i32 dim 1 : vector<8x256xf32>, i32 -> vector<8x256xf32>
    %c23 = arith.constant 23 : index
    %c0_96 = arith.constant 0 : index
    %189 = vector.load %arg2[%c23, %c0_96] : memref<25x256xf32, #tpu.memory_space<vmem>>, vector<1x256xf32>
    %190 = vector.broadcast %189 : vector<1x256xf32> to vector<8x256xf32>
    %191 = arith.mulf %188, %190 : vector<8x256xf32>
    %192 = vector.extract_strided_slice %191 {offsets = [4, 0], sizes = [4, 256], strides = [1, 1]} : vector<8x256xf32> to vector<4x256xf32>
    %c128 = arith.constant 128 : index
    %c0_97 = arith.constant 0 : index
    %193 = vector.load %arg8[%c128, %c0_97] : memref<137x256xf32, #tpu.memory_space<vmem>>, vector<4x256xf32>
    tpu.vector_store %arg8[%c128, %c0_97], %192 {strides = array<i32>} : memref<137x256xf32, #tpu.memory_space<vmem>>, vector<4x256xf32>,
    %c222_i32 = arith.constant 222 : i32
    %194 = tpu.dynamic_rotate %59 by %c222_i32 dim 1 : vector<8x256xf32>, i32 -> vector<8x256xf32>
    %c24_98 = arith.constant 24 : index
    %c0_99 = arith.constant 0 : index
    %195 = vector.load %arg2[%c24_98, %c0_99] : memref<25x256xf32, #tpu.memory_space<vmem>>, vector<1x256xf32>
    %196 = vector.broadcast %195 : vector<1x256xf32> to vector<8x256xf32>
    %197 = arith.mulf %194, %196 : vector<8x256xf32>
    %198 = vector.extract_strided_slice %197 {offsets = [4, 0], sizes = [4, 256], strides = [1, 1]} : vector<8x256xf32> to vector<4x256xf32>
    %c132 = arith.constant 132 : index
    %c0_100 = arith.constant 0 : index
    %199 = vector.load %arg8[%c132, %c0_100] : memref<137x256xf32, #tpu.memory_space<vmem>>, vector<4x256xf32>
    tpu.vector_store %arg8[%c132, %c0_100], %198 {strides = array<i32>} : memref<137x256xf32, #tpu.memory_space<vmem>>, vector<4x256xf32>,
    %cst_101 = arith.constant 1.000000e+00 : f32
    %200 = vector.broadcast %cst_101 : f32 to vector<1x256xf32>
    %c136 = arith.constant 136 : index
    %c0_102 = arith.constant 0 : index
    %201 = vector.load %arg8[%c136, %c0_102] : memref<137x256xf32, #tpu.memory_space<vmem>>, vector<1x256xf32>
    tpu.vector_store %arg8[%c136, %c0_102], %200 {strides = array<i32>} : memref<137x256xf32, #tpu.memory_space<vmem>>, vector<1x256xf32>,
    %c0_103 = arith.constant 0 : index
    %c0_104 = arith.constant 0 : index
    %202 = vector.load %arg5[%c0_103, %c0_104] : memref<16x137xf32, #tpu.memory_space<vmem>>, vector<16x137xf32>
    %c0_105 = arith.constant 0 : index
    %c0_106 = arith.constant 0 : index
    %203 = vector.load %arg8[%c0_105, %c0_106] : memref<137x256xf32, #tpu.memory_space<vmem>>, vector<137x256xf32>
    %cst_107 = arith.constant dense<0.000000e+00> : vector<16x256xf32>
    %204 = tpu.matmul %202, %203, %cst_107 {dimension_numbers = #tpu.dot_dimension_numbers<[1], [0], [0], [1], [0, 0, 1, 1], [], []>} : vector<16x137xf32>, vector<137x256xf32>, vector<16x256xf32> -> vector<16x256xf32>
    %cst_108 = arith.constant 0.000000e+00 : f32
    %205 = vector.broadcast %cst_108 : f32 to vector<16x256xf32>
    %206 = arith.maximumf %204, %205 : vector<16x256xf32>
    %207 = vector.extract_strided_slice %206 {offsets = [0, 0], sizes = [8, 256], strides = [1, 1]} : vector<16x256xf32> to vector<8x256xf32>
    %c0_109 = arith.constant 0 : index
    %c8_110 = arith.constant 8 : index
    %c0_111 = arith.constant 0 : index
    %208 = vector.load %arg6[%c0_109, %c8_110, %c0_111] : memref<1x32x256xf32, #tpu.memory_space<vmem>>, vector<1x8x256xf32>
    %209 = vector.shape_cast %208 : vector<1x8x256xf32> to vector<8x256xf32>
    %210 = vector.shape_cast %207 : vector<8x256xf32> to vector<1x8x256xf32>
    tpu.vector_store %arg6[%c0_109, %c8_110, %c0_111], %210 {strides = array<i32>} : memref<1x32x256xf32, #tpu.memory_space<vmem>>, vector<1x8x256xf32>,
    %211 = vector.extract_strided_slice %206 {offsets = [8, 0], sizes = [8, 256], strides = [1, 1]} : vector<16x256xf32> to vector<8x256xf32>
    %c0_112 = arith.constant 0 : index
    %c16_113 = arith.constant 16 : index
    %c0_114 = arith.constant 0 : index
    %212 = vector.load %arg6[%c0_112, %c16_113, %c0_114] : memref<1x32x256xf32, #tpu.memory_space<vmem>>, vector<1x8x256xf32>
    %213 = vector.shape_cast %212 : vector<1x8x256xf32> to vector<8x256xf32>
    %214 = vector.shape_cast %211 : vector<8x256xf32> to vector<1x8x256xf32>
    tpu.vector_store %arg6[%c0_112, %c16_113, %c0_114], %214 {strides = array<i32>} : memref<1x32x256xf32, #tpu.memory_space<vmem>>, vector<1x8x256xf32>,
    return
  }
  func.func @transform_0(%arg0: i32) -> (i32, i32, i32) {
    %c0_i32 = arith.constant 0 : i32
    %c0_i32_0 = arith.constant 0 : i32
    %c0_i32_1 = arith.constant 0 : i32
    return %arg0, %c0_i32, %c0_i32_0 : i32, i32, i32
  }
  func.func @transform_1(%arg0: i32) -> (i32, i32) {
    %c0_i32 = arith.constant 0 : i32
    %c0_i32_0 = arith.constant 0 : i32
    %c0_i32_1 = arith.constant 0 : i32
    return %c0_i32, %c0_i32_0 : i32, i32
  }
  func.func @transform_2(%arg0: i32) -> (i32, i32) {
    %c0_i32 = arith.constant 0 : i32
    %c0_i32_0 = arith.constant 0 : i32
    %c0_i32_1 = arith.constant 0 : i32
    return %c0_i32, %c0_i32_0 : i32, i32
  }
  func.func @transform_3(%arg0: i32) -> (i32, i32) {
    %c0_i32 = arith.constant 0 : i32
    %c0_i32_0 = arith.constant 0 : i32
    %c0_i32_1 = arith.constant 0 : i32
    return %c0_i32, %c0_i32_0 : i32, i32
  }
  func.func @transform_4(%arg0: i32) -> (i32, i32) {
    %c0_i32 = arith.constant 0 : i32
    %c0_i32_0 = arith.constant 0 : i32
    %c0_i32_1 = arith.constant 0 : i32
    return %c0_i32, %c0_i32_0 : i32, i32
  }
  func.func @transform_5(%arg0: i32) -> (i32, i32, i32) {
    %c0_i32 = arith.constant 0 : i32
    %c0_i32_0 = arith.constant 0 : i32
    %c0_i32_1 = arith.constant 0 : i32
    return %arg0, %c0_i32, %c0_i32_0 : i32, i32, i32
  }
}

</mosaic_0001>

<bundles_post_ra>
// kernel: inception_forward.1
= control target key start
LH: loop header
LB: loop body
LE: loop exit
PB: predicated region body
PF: predicated region fallthrough
CT: control target
= control target key end

     0   :  { %s1706_s18 = smov 0   ;;  %s2147_s0 = inlined_call_operand.vmem [shape: f32[2,4,256], index: 0, kind: input, shape index: {}]   ;;  %s2148_s1 = inlined_call_operand.vmem [shape: f32[25,256], index: 1, kind: input, shape index: {}]   ;;  %s2149_s2 = inlined_call_operand.vmem [shape: f32[9,256], index: 2, kind: input, shape index: {}]   ;;  %s2150_s3 = inlined_call_operand.vmem [shape: f32[24,5], index: 3, kind: input, shape index: {}]   ;;  %s2151_s4 = inlined_call_operand.vmem [shape: f32[16,137], index: 4, kind: input, shape index: {}]   ;;  %s2152_s5 = inlined_call_operand.vmem [shape: f32[2,32,256], index: 5, kind: output, shape index: {}]  }
   0x1 LB: > { %s1491_s19 = sadd.s32 4294967295, %s1647_s18   ;;  %p1495_p0 = scmp.ge.s32.totalorder %s1647_s18, 1  ;;  %s1647_s18 = sphi %s1706_s18, %s15_s18  }
   0x2   : > { %p187_p1 = scmp.lt.s32.totalorder %s1647_s18, 3 }
   0x4   : > { %p188_p2 = pnand %p1495_p0, %p187_p1 }
   0x5   : > { %p215_p3 = scmp.lt.s32.totalorder (!%p188_p2), %s1491_s19, 1  ;;  %v233_v0 = vlaneseq (!%p188_p2)  ;;  %v1649_v1 = vmov (!%p188_p2), 0.0   ;;  %v1650_v2 = vmov (!%p188_p2), 1.0   ;;  %s1651_s24 = smov (!%p188_p2), 16   ;;  %vm477_vm2 = vcmask (!%p188_p2), 1044480   ;;  %v1739_v7 = vld [vmem:[%s2150_s3] sm:$0xff] (!%p188_p2) }
   0x6   : > { %191 = sbr.rel (%p188_p2) target bundleno = 688 (0x2b0), region = 40  ;;  %554 = vmatprep.mubr.f32.mxu0 (!%p188_p2), %v1649_v1  ;;  %635 = vmatprep.mubr.f32.mxu1 (!%p188_p2), %v1649_v1  ;;  %s1652_s25 = smov (!%p188_p2), 17   ;;  %vm467_vm3 = vcmask (!%p188_p2), 39936   ;;  %v1750_v8 = vld [vmem:[%s2150_s3 + $0x8] sm:$0xff] (!%p188_p2)  ;;  %vm1337_vm12 = vcmask (!%p188_p2), 72704  }
   0x7   : > { %vm455_vm0 = vcmp.lt.s32.totalorder (!%p188_p2), %v233_v0, 512  ;;  %vm1292_vm1 = vcmp.lt.s32.totalorder (!%p188_p2), %v233_v0, 256  ;;  %s1653_s26 = smov (!%p188_p2), 15   ;;  %s1654_s29 = smov (!%p188_p2), 1   ;;  %v241_v9 = vshrl.u32 (!%p188_p2), %v233_v0, 7  ;;  %v1769_v12 = vand.u32 (!%p188_p2), 127, %v233_v0 }
   0x8   : > { %458 = vst.msk [vmem:[#allocation2 + $0x4] ss:$8 sm:$0xf] (!%p188_p2), %vm455_vm0, %v1650_v2  ;;  %s1655_s7 = smov (!%p188_p2), 127   ;;  %s1656_s8 = smov (!%p188_p2), 113  }
   0x9   : > { %1295 = vst.msk [vmem:[#allocation3 + $0x110] ss:$8 sm:$0x3] (!%p188_p2), %vm1292_vm1, %v1650_v2  ;;  %s1657_s9 = smov (!%p188_p2), 112   ;;  %s1658_s10 = smov (!%p188_p2), 111   ;;  %v1771_v13 = vsub.s32 (!%p188_p2), 0, %v241_v9 }
   0xa   : > { %v1773_v14 = vsub.s32 (!%p188_p2), 1, %v241_v9  ;;  %vm261_vm4 = vcmp.lt.s32.totalorder (!%p188_p2), %v1769_v12, 16  ;;  %v1500_v16 = vld [vmem:[%s2149_s2 + $0x1] ss:$8 sm:$0x3] (!%p188_p2)  ;;  %vm288_vm5 = vcmp.lt.s32.totalorder (!%p188_p2), %v1769_v12, 15 }
   0xb   : > { %v270_v18 = vrot.slane (!%p188_p2), %v1500_v16, %v1771_v13  ;;  %v1501_v23 = vld [vmem:[%s2149_s2 + $0x2] ss:$8 sm:$0x3] (!%p188_p2)  ;;  %vm235_vm6 = vcmp.lt.s32.totalorder (!%p188_p2), %v1769_v12, 17  ;;  %vm315_vm7 = vcmp.lt.s32.totalorder (!%p188_p2), %v1769_v12, 1  ;;  %vm342_vm8 = vcmp.lt.s32.totalorder (!%p188_p2), %v1769_v12, 127 }
   0xc   : > { %v274_v19 = vrot.slane (!%p188_p2), %v1500_v16, %v1773_v14  ;;  %v297_v27 = vrot.slane (!%p188_p2), %v1501_v23, %v1771_v13  ;;  %v301_v28 = vrot.slane (!%p188_p2), %v1501_v23, %v1773_v14  ;;  %v238_v30 = vld [vmem:[%s2149_s2] ss:$8 sm:$0x3] (!%p188_p2)  ;;  %v1502_v41 = vld [vmem:[%s2149_s2 + $0x3] ss:$8 sm:$0x3] (!%p188_p2) }
   0xd   : > { %s2154_s19 = smov (!%p215_p3, %s1491_s19), 1  ;;  %v243_v32 = vrot.slane %v238_v30, %v1771_v13  ;;  %v247_v33 = vrot.slane %v238_v30, %v1773_v14  ;;  %v324_v43 = vrot.slane %v1502_v41, %v1771_v13  ;;  %v328_v44 = vrot.slane %v1502_v41, %v1773_v14  ;;  %v1503_v54 = vld [vmem:[%s2149_s2 + $0x5] ss:$8 sm:$0x3]  ;;  %s1661_s21 = smov 33  }
   0xe   : > { %s1547_s20 = sshll.u32 %s2154_s19, 3  ;;  %v351_v56 = vrot.slane %v1503_v54, %v1771_v13  ;;  %v355_v57 = vrot.slane %v1503_v54, %v1773_v14  ;;  %vm369_vm9 = vcmp.lt.s32.totalorder %v1769_v12, 113  ;;  %vm396_vm10 = vcmp.lt.s32.totalorder %v1769_v12, 112  ;;  %s1548_s12 = sshll.u32 %s2154_s19, 6 }
   0xf   : > { %s219_s23 = scalar_lea.vmem %s2147_s0, %s1547_s20  ;;  %vm423_vm11 = vcmp.lt.s32.totalorder %v1769_v12, 111  ;;  %s1868_s15 = scalar_lea.vmem %s2152_s5, %s1548_s12  ;;  %vm664_vm13 = vcmp.lt.s32.totalorder %v1769_v12, 34  ;;  %vm717_vm14 = vcmp.lt.s32.totalorder %v1769_v12, 32  ;;  %vm693_vm15 = vcmp.lt.s32.totalorder %v1769_v12, 33 }
  0x10   : > { %v1722_v3 = vld [vmem:[%s219_s23] sm:$0xff]  ;;  %s1659_s19 = smov 34   ;;  %s1660_s20 = smov 32   ;;  %vm747_vm0 = vcmp.lt.s32.totalorder %v1769_v12, 31  ;;  %vm771_vm1 = vcmp.lt.s32.totalorder %v1769_v12, 30 }
  0x11   : > { %v227_v4 = vcombine.high %v1722_v3, %v1722_v3  ;;  %446 = vst [vmem:[#allocation2] sm:$0xf] %v1722_v3  ;;  %257 = vrot.lane.b32.xlu1 %v1722_v3, %s1651_s24  ;;  %229 = vrot.lane.b32.xlu0 %v1722_v3, %s1652_s25  ;;  %s1662_s22 = smov 31   ;;  %s1663_s23 = smov 30  }
  0x12   : > { %s1664_s27 = smov 18   ;;  %s1665_s28 = smov 14  }
  0x13   : > { %447 = vst [vmem:[#allocation2 + $0x8] sm:$0xf] %v227_v4  ;;  %s1666_s30 = smov 2   ;;  %s1673_s6 = smov 95  }
  0x14   : > { %s1674_s11 = smov 94  }
  0x15   : > { %284 = vrot.lane.b32.xlu0 %v1722_v3, %s1653_s26  ;;  %259 = vrot.lane.b32.xlu1 %v227_v4, %s1651_s24 }
  0x18   : > { %v463_v5 = vld [vmem:[#allocation2] sm:$0x1f] }
  0x19   : > { %286 = vrot.lane.b32.xlu1 %v227_v4, %s1653_s26  ;;  %231 = vrot.lane.b32.xlu0 %v227_v4, %s1652_s25 }
  0x1a   : > { %v464_v6 = vld [vmem:[#allocation2 + $0x8] sm:$0x1f] }
  0x1b   : > { %1507 = vmatprep.subr.msk.mxu0 %vm477_vm2, %v464_v6 }
  0x1c   : > { %1508 = vmatpush1.msk.msra.mxu0 %vm477_vm2, %v463_v5 }
  0x1d   : > { %1509 = vmatmul.mubr.msk.f32.vlgmr.msra.gmra.mrb[0].mxu0 %vm467_vm3, %v1739_v7  ;;  %313 = vrot.lane.b32.xlu1 %v227_v4, %s1654_s29 }
  0x1e   : > { %560 = vmatprep.mubr.f32.mxu0 %v1649_v1  ;;  %311 = vrot.lane.b32.xlu0 %v1722_v3, %s1654_s29 }
  0x21   : > { %1510 = vmatmul.mubr.msk.f32.gmra.mrb[2].mxu0 %vm467_vm3, %v1750_v8  ;;  %340 = vrot.lane.b32.xlu1 %v227_v4, %s1655_s7 }
  0x22   : > { %338 = vrot.lane.b32.xlu0 %v1722_v3, %s1655_s7  ;;  %566 = vmatprep.mubr.f32.mxu0 %v1649_v1 }
  0x25   : > { %367 = vrot.lane.b32.xlu1 %v227_v4, %s1656_s8 }
  0x26   : > { %365 = vrot.lane.b32.xlu0 %v1722_v3, %s1656_s8 }
  0x29   : > { %394 = vrot.lane.b32.xlu1 %v227_v4, %s1657_s9 }
  0x2a   : > { %392 = vrot.lane.b32.xlu0 %v1722_v3, %s1657_s9 }
  0x2d   : > { %421 = vrot.lane.b32.xlu1 %v227_v4, %s1658_s10 }
  0x2e   : > { %419 = vrot.lane.b32.xlu0 %v1722_v3, %s1658_s10 }
  0x83   : > { %v258_v10 = vpop.permute.xlu1 %257  ;;  %v230_v11 = vpop.permute.xlu0 %229 }
  0x87   : > { %v285_v15 = vpop.permute.xlu0 %284  ;;  %v260_v17 = vpop.permute.xlu1 %259 }
  0x88   : > { %v263_v20 = vsel %vm261_vm4, %v260_v17, %v258_v10  ;;  %v262_v21 = vsel %vm261_vm4, %v258_v10, %v260_v17 }
  0x89   : > { %v277_v22 = vadd.f32 %v270_v18, %v263_v20  ;;  %v278_v26 = vadd.f32 %v274_v19, %v262_v21  ;;  %v1505_v20 = vld [vmem:[%s2149_s2 + $0x7] ss:$8 sm:$0x3] }
  0x8a   : > { %v405_v23 = vrot.slane %v1505_v20, %v1771_v13 }
  0x8b   : > { %v287_v24 = vpop.permute.xlu1 %286  ;;  %v232_v25 = vpop.permute.xlu0 %231  ;;  %v281_v46 = vcombine.low %v277_v22, %v278_v26 }
  0x8c   : > { %v289_v29 = vsel %vm288_vm5, %v285_v15, %v287_v24  ;;  %v290_v31 = vsel %vm288_vm5, %v287_v24, %v285_v15  ;;  %v236_v34 = vsel %vm235_vm6, %v230_v11, %v232_v25  ;;  %v237_v36 = vsel %vm235_vm6, %v232_v25, %v230_v11 }
  0x8d   : > { %v304_v35 = vadd.f32 %v297_v27, %v290_v31  ;;  %v305_v37 = vadd.f32 %v301_v28, %v289_v29  ;;  %v250_v38 = vadd.f32 %v243_v32, %v237_v36  ;;  %v251_v39 = vadd.f32 %v247_v33, %v236_v34  ;;  %v1506_v31 = vld [vmem:[%s2149_s2 + $0x10] ss:$8 sm:$0x3] }
  0x8e   : > { %v409_v24 = vrot.slane %v1505_v20, %v1773_v14  ;;  %v432_v34 = vrot.slane %v1506_v31, %v1771_v13 }
  0x8f   : > { %v314_v40 = vpop.permute.xlu1 %313  ;;  %v254_v47 = vcombine.low %v250_v38, %v251_v39  ;;  %v308_v51 = vcombine.low %v304_v35, %v305_v37  ;;  %v436_v35 = vrot.slane %v1506_v31, %v1773_v14 }
  0x90   : > { %v312_v42 = vpop.permute.xlu0 %311 }
  0x91   : > { %v316_v45 = vsel %vm315_vm7, %v312_v42, %v314_v40  ;;  %v317_v48 = vsel %vm315_vm7, %v314_v40, %v312_v42  ;;  %v256_v52 = vmax.f32 %v1722_v3, %v254_v47  ;;  %v1504_v3 = vld [vmem:[%s2149_s2 + $0x6] ss:$8 sm:$0x3] }
  0x92   : > { %v331_v49 = vadd.f32 %v324_v43, %v317_v48  ;;  %v332_v50 = vadd.f32 %v328_v44, %v316_v45  ;;  %v378_v6 = vrot.slane %v1504_v3, %v1771_v13  ;;  %v382_v9 = vrot.slane %v1504_v3, %v1773_v14 }
  0x93   : > { %v341_v53 = vpop.permute.xlu1 %340  ;;  %v283_v59 = vmax.f32 %v256_v52, %v281_v46 }
  0x94   : > { %v339_v55 = vpop.permute.xlu0 %338  ;;  %v335_v60 = vcombine.low %v331_v49, %v332_v50 }
  0x95   : > { %v343_v58 = vsel %vm342_vm8, %v339_v55, %v341_v53  ;;  %v344_v61 = vsel %vm342_vm8, %v341_v53, %v339_v55  ;;  %v310_v0 = vmax.f32 %v283_v59, %v308_v51  ;;  %v667_v59 = vld [vmem:[%s2148_s1] ss:$8 sm:$0x3] }
  0x96   : > { %v358_v62 = vadd.f32 %v351_v56, %v343_v58  ;;  %v359_v63 = vadd.f32 %v355_v57, %v344_v61  ;;  %v462_v56 = vld [vmem:[%s2150_s3 + $0x10] sm:$0xff]  ;;  %v1298_v57 = vld [vmem:[%s2151_s4 + $0x8] sm:$0xff]  ;;  %v1300_v58 = vld [vmem:[%s2151_s4 + $0x18] sm:$0xff]  ;;  %v676_v61 = vrot.slane %v667_v59, %v1773_v14 }
  0x97   : > { %v368_v2 = vpop.permute.xlu1 %367  ;;  %v337_v11 = vmax.f32 %v310_v0, %v335_v60  ;;  %1511 = vmatmul.mubr.msk.f32.gmra.mrb[4].mxu0 %vm467_vm3, %v462_v56  ;;  %v672_v60 = vrot.slane %v667_v59, %v1771_v13 }
  0x98   : > { %v366_v4 = vpop.permute.xlu0 %365  ;;  %v362_v5 = vcombine.low %v358_v62, %v359_v63  ;;  %1543 = vmatprep.mubr.msk.f32.mxu0 %vm1337_vm12, %v1298_v57  ;;  %v1518_v63 = vld [vmem:[%s2148_s1 + $0x2] ss:$8 sm:$0x3] }
  0x99   : > { %v370_v10 = vsel %vm369_vm9, %v366_v4, %v368_v2  ;;  %v371_v15 = vsel %vm369_vm9, %v368_v2, %v366_v4 }
  0x9a   : > { %v385_v16 = vadd.f32 %v378_v6, %v370_v10  ;;  %v386_v17 = vadd.f32 %v382_v9, %v371_v15  ;;  %v364_v18 = vmax.f32 %v337_v11, %v362_v5  ;;  %v726_v6 = vrot.slane %v1518_v63, %v1771_v13  ;;  %v1517_v11 = vld [vmem:[%s2148_s1 + $0x1] ss:$8 sm:$0x3] }
  0x9b   : > { %v395_v19 = vpop.permute.xlu1 %394  ;;  %v730_v9 = vrot.slane %v1518_v63, %v1773_v14 }
  0x9c   : > { %v393_v21 = vpop.permute.xlu0 %392  ;;  %v389_v22 = vcombine.low %v385_v16, %v386_v17 }
  0x9d   : > { %v397_v25 = vsel %vm396_vm10, %v393_v21, %v395_v19  ;;  %v398_v26 = vsel %vm396_vm10, %v395_v19, %v393_v21 }
  0x9e   : > { %v391_v27 = vmax.f32 %v364_v18, %v389_v22  ;;  %v412_v28 = vadd.f32 %v405_v23, %v397_v25  ;;  %v413_v29 = vadd.f32 %v409_v24, %v398_v26  ;;  %v702_v22 = vrot.slane %v1517_v11, %v1771_v13  ;;  %v1519_v25 = vld [vmem:[%s2148_s1 + $0x3] ss:$8 sm:$0x3] }
  0x9f   : > { %v422_v30 = vpop.permute.xlu1 %421  ;;  %v706_v23 = vrot.slane %v1517_v11, %v1773_v14 }
  0xa0   : > { %v420_v32 = vpop.permute.xlu0 %419  ;;  %v416_v33 = vcombine.low %v412_v28, %v413_v29 }
  0xa1   : > { %v424_v36 = vsel %vm423_vm11, %v420_v32, %v422_v30  ;;  %v425_v37 = vsel %vm423_vm11, %v422_v30, %v420_v32 }
  0xa2   : > { %v418_v38 = vmax.f32 %v391_v27, %v416_v33  ;;  %v439_v39 = vadd.f32 %v432_v34, %v424_v36  ;;  %v440_v40 = vadd.f32 %v436_v35, %v425_v37  ;;  %v756_v33 = vrot.slane %v1519_v25, %v1771_v13  ;;  %v1520_v36 = vld [vmem:[%s2148_s1 + $0x4] ss:$8 sm:$0x3] }
  0xa3   : > { %v760_v34 = vrot.slane %v1519_v25, %v1773_v14 }
  0xa4   : > { %v443_v41 = vcombine.low %v439_v39, %v440_v40 }
  0xa6   : > { %v445_v42 = vmax.f32 %v418_v38, %v443_v41 }
  0xa8   : > { %v449_v43 = vcombine.high %v445_v42, %v445_v42  ;;  %451 = vst [vmem:[#allocation2 + $0x10] sm:$0xf] %v445_v42  ;;  %v780_v42 = vrot.slane %v1520_v36, %v1771_v13 }
  0xaa   : > { %452 = vst [vmem:[#allocation2 + $0x18] sm:$0xf] %v449_v43  ;;  %v784_v43 = vrot.slane %v1520_v36, %v1773_v14 }
  0xaf   : > { %v465_v44 = vld [vmem:[#allocation2 + $0x10] sm:$0x1f] }
  0xb1   : > { %v466_v45 = vld [vmem:[#allocation2 + $0x18] sm:$0x1f] }
  0xb2   : > { %1512 = vmatprep.subr.msk.mxu1 %vm477_vm2, %v466_v45  ;;  %v1521_v45 = vld [vmem:[%s2148_s1 + $0x5] ss:$8 sm:$0x3] }
  0xb3   : > { %1513 = vmatpush1.msk.msra.mxu1 %vm477_vm2, %v465_v44  ;;  %vm801_vm2 = vcmp.lt.s32.totalorder %v1769_v12, 18 }
  0xb4   : > { %1514 = vmatmul.mubr.msk.f32.vlgmr.msra.gmra.mrb[0].mxu1 %vm467_vm3, %v1739_v7  ;;  %v1528_v7 = vld [vmem:[%s2148_s1 + $0x14] ss:$8 sm:$0x3] }
  0xb5   : > { %639 = vmatprep.mubr.f32.mxu1 %v1649_v1  ;;  %v977_v50 = vrot.slane %v1528_v7, %v1773_v14 }
  0xb8   : > { %1515 = vmatmul.mubr.msk.f32.gmra.mrb[2].mxu1 %vm467_vm3, %v1750_v8  ;;  %v973_v8 = vrot.slane %v1528_v7, %v1771_v13 }
  0xb9   : > { %643 = vmatprep.mubr.f32.mxu1 %v1649_v1 }
  0xbc   : > { %1516 = vmatmul.mubr.msk.f32.gmra.mrb[4].mxu1 %vm467_vm3, %v462_v56  ;;  %vm894_vm3 = vcmp.lt.s32.totalorder %v1769_v12, 14 }
  0xbd   : > { %1544 = vmatprep.mubr.msk.f32.mxu1 %vm1337_vm12, %v1300_v58  ;;  %vm1272_vm12 = vcmp.lt.s32.totalorder %v1769_v12, 94 }
  0xf0   : > { %v556_v46 = vpop.f32.mrb[0].mxu0 }
  0xf1   : > { %v650_v47 = vmax.f32 %v556_v46, 0.0  ;;  %v558_v48 = vpop.f32.mrb[1].mxu0 }
  0xf2   : > { %v651_v49 = vmax.f32 %v558_v48, 0.0 }
  0xf3   : > { %656 = vst [vmem:[%s1868_s15] sm:$0xff] %v650_v47 }
  0xf4   : > { %657 = vst [vmem:[%s1868_s15 + $0x8] sm:$0xff] %v651_v49  ;;  %v562_v1 = vpop.f32.mrb[2].mxu0 }
  0xf5   : > { %v1877_v51 = vmax.f32 %v562_v1, 0.0  ;;  %v564_v52 = vpop.f32.mrb[3].mxu0  ;;  %v814_v1 = vrot.slane %v1521_v45, %v1773_v14 }
  0xf6   : > { %v1879_v53 = vmax.f32 %v564_v52, 0.0 }
  0xf7   : > { %660 = vrot.lane.b32.xlu0 %v1877_v51, %s1659_s19  ;;  %v1883_v54 = vmul.f32 %v973_v8, %v1877_v51  ;;  %v810_v8 = vrot.slane %v1521_v45, %v1771_v13 }
  0xf8   : > { %662 = vrot.lane.b32.xlu1 %v1879_v53, %s1659_s19  ;;  %v1887_v55 = vmul.f32 %v977_v50, %v1879_v53 }
  0xfb   : > { %713 = vrot.lane.b32.xlu0 %v1877_v51, %s1660_s20 }
  0xfc   : > { %715 = vrot.lane.b32.xlu1 %v1879_v53, %s1660_s20 }
  0xff   : > { %689 = vrot.lane.b32.xlu0 %v1877_v51, %s1661_s21 }
 0x100   : > { %691 = vrot.lane.b32.xlu1 %v1879_v53, %s1661_s21 }
 0x103   : > { %743 = vrot.lane.b32.xlu0 %v1877_v51, %s1662_s22 }
 0x104   : > { %745 = vrot.lane.b32.xlu1 %v1879_v53, %s1662_s22 }
 0x107   : > { %767 = vrot.lane.b32.xlu0 %v1877_v51, %s1663_s23 }
 0x108   : > { %769 = vrot.lane.b32.xlu1 %v1879_v53, %s1663_s23 }
 0x10b   : > { %797 = vrot.lane.b32.xlu0 %v1877_v51, %s1664_s27 }
 0x10c   : > { %799 = vrot.lane.b32.xlu1 %v1879_v53, %s1664_s27 }
 0x10f   : > { %821 = vrot.lane.b32.xlu0 %v1877_v51, %s1652_s25 }
 0x110   : > { %823 = vrot.lane.b32.xlu1 %v1879_v53, %s1652_s25  ;;  %s1668_s25 = smov 114  }
 0x113   : > { %844 = vrot.lane.b32.xlu0 %v1877_v51, %s1651_s24 }
 0x114   : > { %846 = vrot.lane.b32.xlu1 %v1879_v53, %s1651_s24  ;;  %s1667_s24 = smov 126  }
 0x117   : > { %867 = vrot.lane.b32.xlu0 %v1877_v51, %s1653_s26 }
 0x118   : > { %869 = vrot.lane.b32.xlu1 %v1879_v53, %s1653_s26  ;;  %s1669_s26 = smov 110  }
 0x11b   : > { %890 = vrot.lane.b32.xlu0 %v1877_v51, %s1665_s28 }
 0x11c   : > { %892 = vrot.lane.b32.xlu1 %v1879_v53, %s1665_s28 }
 0x11f   : > { %920 = vrot.lane.b32.xlu0 %v1877_v51, %s1666_s30 }
 0x120   : > { %922 = vrot.lane.b32.xlu1 %v1879_v53, %s1666_s30 }
 0x123   : > { %944 = vrot.lane.b32.xlu0 %v1877_v51, %s1654_s29 }
 0x124   : > { %946 = vrot.lane.b32.xlu1 %v1879_v53, %s1654_s29  ;;  %s1670_s29 = smov 97  }
 0x127   : > { %984 = vrot.lane.b32.xlu0 %v1877_v51, %s1655_s7 }
 0x128   : > { %986 = vrot.lane.b32.xlu1 %v1879_v53, %s1655_s7  ;;  %s1671_s7 = smov 98  }
 0x12b   : > { %1007 = vrot.lane.b32.xlu0 %v1877_v51, %s1667_s24 }
 0x12c   : > { %1009 = vrot.lane.b32.xlu1 %v1879_v53, %s1667_s24 }
 0x12f   : > { %1037 = vrot.lane.b32.xlu0 %v1877_v51, %s1668_s25 }
 0x130   : > { %1039 = vrot.lane.b32.xlu1 %v1879_v53, %s1668_s25 }
 0x133   : > { %1061 = vrot.lane.b32.xlu0 %v1877_v51, %s1656_s8 }
 0x134   : > { %1063 = vrot.lane.b32.xlu1 %v1879_v53, %s1656_s8  ;;  %s1672_s8 = smov 96  }
 0x137   : > { %1084 = vrot.lane.b32.xlu0 %v1877_v51, %s1657_s9 }
 0x138   : > { %1086 = vrot.lane.b32.xlu1 %v1879_v53, %s1657_s9 }
 0x13b   : > { %1107 = vrot.lane.b32.xlu0 %v1877_v51, %s1658_s10 }
 0x13c   : > { %1109 = vrot.lane.b32.xlu1 %v1879_v53, %s1658_s10 }
 0x13f   : > { %1130 = vrot.lane.b32.xlu0 %v1877_v51, %s1669_s26 }
 0x140   : > { %1132 = vrot.lane.b32.xlu1 %v1879_v53, %s1669_s26 }
 0x143   : > { %1184 = vrot.lane.b32.xlu0 %v1877_v51, %s1670_s29 }
 0x144   : > { %1186 = vrot.lane.b32.xlu1 %v1879_v53, %s1670_s29 }
 0x147   : > { %1160 = vrot.lane.b32.xlu0 %v1877_v51, %s1671_s7 }
 0x148   : > { %1162 = vrot.lane.b32.xlu1 %v1879_v53, %s1671_s7 }
 0x14b   : > { %1214 = vrot.lane.b32.xlu0 %v1877_v51, %s1672_s8 }
 0x14c   : > { %1216 = vrot.lane.b32.xlu1 %v1879_v53, %s1672_s8 }
 0x14f   : > { %1238 = vrot.lane.b32.xlu0 %v1877_v51, %s1673_s6 }
 0x150   : > { %1240 = vrot.lane.b32.xlu1 %v1879_v53, %s1673_s6 }
 0x153   : > { %1268 = vrot.lane.b32.xlu0 %v1877_v51, %s1674_s11  ;;  %v1522_v51 = vld [vmem:[%s2148_s1 + $0x6] ss:$8 sm:$0x3] }
 0x154   : > { %1270 = vrot.lane.b32.xlu1 %v1879_v53, %s1674_s11 }
 0x169   : > { %v661_v62 = vpop.permute.xlu0 %660 }
 0x16a   : > { %v663_v0 = vpop.permute.xlu1 %662 }
 0x16b   : > { %v665_v2 = vsel %vm664_vm13, %v661_v62, %v663_v0  ;;  %v666_v3 = vsel %vm664_vm13, %v663_v0, %v661_v62  ;;  %v837_v62 = vrot.slane %v1522_v51, %v1773_v14  ;;  %v1523_v0 = vld [vmem:[%s2148_s1 + $0x7] ss:$8 sm:$0x3]  ;;  %vm1344_vm13 = vcmask 1040384  }
 0x16c   : > { %v679_v4 = vmul.f32 %v672_v60, %v666_v3  ;;  %v680_v5 = vmul.f32 %v676_v61, %v665_v2  ;;  %v833_v61 = vrot.slane %v1522_v51, %v1771_v13  ;;  %v1527_v51 = vld [vmem:[%s2148_s1 + $0x13] ss:$8 sm:$0x3] }
 0x16d   : > { %v714_v10 = vpop.permute.xlu0 %713 }
 0x16e   : > { %v683_v15 = vrot.slane %v679_v4, 4  ;;  %v684_v16 = vrot.slane %v680_v5, 4  ;;  %v716_v17 = vpop.permute.xlu1 %715 }
 0x16f   : > { %v718_v18 = vsel %vm717_vm14, %v714_v10, %v716_v17  ;;  %v719_v19 = vsel %vm717_vm14, %v716_v17, %v714_v10  ;;  %vm1675_vm14 = vmmov 1  }
 0x170   : > { %687 = vst [vmem:[#allocation3] sm:$0xf] %v683_v15  ;;  %688 = vst [vmem:[#allocation3 + $0x8] sm:$0xf] %v684_v16  ;;  %v733_v20 = vmul.f32 %v726_v6, %v719_v19  ;;  %v734_v21 = vmul.f32 %v730_v9, %v718_v18  ;;  %v856_v16 = vrot.slane %v1523_v0, %v1771_v13 }
 0x171   : > { %v690_v24 = vpop.permute.xlu0 %689  ;;  %v860_v19 = vrot.slane %v1523_v0, %v1773_v14  ;;  %v1529_v0 = vld [vmem:[%s2148_s1 + $0x15] ss:$8 sm:$0x3] }
 0x172   : > { %v737_v26 = vrot.slane %v733_v20, 4  ;;  %v738_v27 = vrot.slane %v734_v21, 4  ;;  %v692_v28 = vpop.permute.xlu1 %691  ;;  %v1524_v21 = vld [vmem:[%s2148_s1 + $0x10] ss:$8 sm:$0x3] }
 0x173   : > { %v694_v29 = vsel %vm693_vm15, %v690_v24, %v692_v28  ;;  %v695_v30 = vsel %vm693_vm15, %v692_v28, %v690_v24  ;;  %v883_v28 = vrot.slane %v1524_v21, %v1773_v14  ;;  %vm1582_vm15 = vmpackc.low %vm1344_vm13, %vm1675_vm14 }
 0x174   : > { %741 = vst [vmem:[#allocation3 + $0x10] sm:$0xf] %v737_v26  ;;  %742 = vst [vmem:[#allocation3 + $0x18] sm:$0xf] %v738_v27  ;;  %v709_v31 = vmul.f32 %v702_v22, %v695_v30  ;;  %v710_v32 = vmul.f32 %v706_v23, %v694_v29  ;;  %v879_v27 = vrot.slane %v1524_v21, %v1771_v13 }
 0x175   : > { %v744_v35 = vpop.permute.xlu0 %743  ;;  %v1525_v29 = vld [vmem:[%s2148_s1 + $0x11] ss:$8 sm:$0x3] }
 0x176   : > { %711 = vst [vmem:[#allocation3] sm:$0xf0] %v709_v31  ;;  %712 = vst [vmem:[#allocation3 + $0x8] sm:$0xf0] %v710_v32  ;;  %v746_v37 = vpop.permute.xlu1 %745 }
 0x177   : > { %v748_v38 = vsel %vm747_vm0, %v744_v35, %v746_v37  ;;  %v749_v39 = vsel %vm747_vm0, %v746_v37, %v744_v35 }
 0x178   : > { %v763_v40 = vmul.f32 %v756_v33, %v749_v39  ;;  %v764_v41 = vmul.f32 %v760_v34, %v748_v38  ;;  %v903_v38 = vrot.slane %v1525_v29, %v1771_v13 }
 0x179   : > { %v768_v44 = vpop.permute.xlu0 %767 }
 0x17a   : > { %765 = vst [vmem:[#allocation3 + $0x10] sm:$0xf0] %v763_v40  ;;  %766 = vst [vmem:[#allocation3 + $0x18] sm:$0xf0] %v764_v41  ;;  %v770_v46 = vpop.permute.xlu1 %769  ;;  %v907_v41 = vrot.slane %v1525_v29, %v1773_v14 }
 0x17b   : > { %v772_v7 = vsel %vm771_vm1, %v768_v44, %v770_v46  ;;  %v773_v47 = vsel %vm771_vm1, %v770_v46, %v768_v44 }
 0x17c   : > { %v787_v48 = vmul.f32 %v780_v42, %v773_v47  ;;  %v788_v49 = vmul.f32 %v784_v43, %v772_v7  ;;  %v1526_v42 = vld [vmem:[%s2148_s1 + $0x12] ss:$8 sm:$0x3] }
 0x17d   : > { %v798_v50 = vpop.permute.xlu0 %797  ;;  %v1302_v63 = vld [vmem:[#allocation3 + $0x8] sm:$0xff]  ;;  %v1301_v4 = vld [vmem:[#allocation3] sm:$0xff] }
 0x17e   : > { %v791_v52 = vrot.slane %v787_v48, 4  ;;  %v792_v53 = vrot.slane %v788_v49, 4  ;;  %v800_v56 = vpop.permute.xlu1 %799  ;;  %v933_v48 = vrot.slane %v1526_v42, %v1771_v13 }
 0x17f   : > { %v802_v57 = vsel %vm801_vm2, %v798_v50, %v800_v56  ;;  %v803_v58 = vsel %vm801_vm2, %v800_v56, %v798_v50 }
 0x180   : > { %795 = vst [vmem:[#allocation3 + $0x20] sm:$0xf] %v791_v52  ;;  %796 = vst [vmem:[#allocation3 + $0x28] sm:$0xf] %v792_v53  ;;  %v817_v59 = vmul.f32 %v810_v8, %v803_v58  ;;  %v818_v60 = vmul.f32 %v814_v1, %v802_v57  ;;  %v937_v1 = vrot.slane %v1526_v42, %v1773_v14 }
 0x181   : > { %v822_v2 = vpop.permute.xlu0 %821  ;;  %v1304_v3 = vld [vmem:[#allocation3 + $0x18] sm:$0xff]  ;;  %v1303_v5 = vld [vmem:[#allocation3 + $0x10] sm:$0xff] }
 0x182   : > { %819 = vst [vmem:[#allocation3 + $0x20] sm:$0xf0] %v817_v59  ;;  %820 = vst [vmem:[#allocation3 + $0x28] sm:$0xf0] %v818_v60  ;;  %v824_v6 = vpop.permute.xlu1 %823  ;;  %v1549_v9 = vpack.c.bf16 %v1304_v3, %v1302_v63  ;;  %v1551_v10 = vpack.c.bf16 %v1303_v5, %v1301_v4 }
 0x183   : > { %v825_v11 = vsel %vm235_vm6, %v822_v2, %v824_v6  ;;  %v826_v15 = vsel %vm235_vm6, %v824_v6, %v822_v2  ;;  %vm1041_vm6 = vcmp.lt.s32.totalorder %v1769_v12, 114 }
 0x184   : > { %v840_v17 = vmul.f32 %v833_v61, %v826_v15  ;;  %v841_v18 = vmul.f32 %v837_v62, %v825_v11  ;;  %1550 = vmatprep.subr.bf16.mxu0 %v1549_v9  ;;  %1587 = vmatprep.subr.bf16.mxu1 %v1549_v9  ;;  %v956_v61 = vrot.slane %v1527_v51, %v1771_v13  ;;  %v1530_v15 = vld [vmem:[%s2148_s1 + $0x16] ss:$8 sm:$0x3] }
 0x185   : > { %v845_v20 = vpop.permute.xlu0 %844  ;;  %1552 = vmatpush1.bf16.msra.mxu0 %v1551_v10  ;;  %1596 = vmatpush1.bf16.msra.mxu1 %v1551_v10  ;;  %v960_v62 = vrot.slane %v1527_v51, %v1773_v14  ;;  %v996_v9 = vrot.slane %v1529_v0, %v1771_v13  ;;  %v1000_v10 = vrot.slane %v1529_v0, %v1773_v14  ;;  %v1535_v0 = vld [vmem:[%s2148_s1 + $0x23] ss:$8 sm:$0x3] }
 0x186   : > { %v847_v22 = vpop.permute.xlu1 %846  ;;  %v1020_v21 = vrot.slane %v1530_v15, %v1771_v13 }
 0x187   : > { %v848_v23 = vsel %vm261_vm4, %v845_v20, %v847_v22  ;;  %v849_v24 = vsel %vm261_vm4, %v847_v22, %v845_v20  ;;  %vm924_vm4 = vcmp.lt.s32.totalorder %v1769_v12, 2  ;;  %v1024_v22 = vrot.slane %v1530_v15, %v1773_v14 }
 0x188   : > { %v863_v25 = vmul.f32 %v856_v16, %v849_v24  ;;  %v864_v26 = vmul.f32 %v860_v19, %v848_v23  ;;  %v1531_v23 = vld [vmem:[%s2148_s1 + $0x17] ss:$8 sm:$0x3]  ;;  %v1143_v15 = vrot.slane %v1535_v0, %v1771_v13 }
 0x189   : > { %v868_v30 = vpop.permute.xlu0 %867  ;;  %v1306_v31 = vld [vmem:[#allocation3 + $0x28] sm:$0xff]  ;;  %v1305_v32 = vld [vmem:[#allocation3 + $0x20] sm:$0xff] }
 0x18a   : > { %v870_v33 = vpop.permute.xlu1 %869  ;;  %v1553_v34 = vpack.c.bf16 %v841_v18, %v1306_v31  ;;  %v1555_v35 = vpack.c.bf16 %v840_v17, %v1305_v32  ;;  %v1050_v32 = vrot.slane %v1531_v23, %v1771_v13 }
 0x18b   : > { %v871_v36 = vsel %vm288_vm5, %v868_v30, %v870_v33  ;;  %v872_v37 = vsel %vm288_vm5, %v870_v33, %v868_v30  ;;  %vm1011_vm5 = vcmp.lt.s32.totalorder %v1769_v12, 126  ;;  %v1054_v33 = vrot.slane %v1531_v23, %v1773_v14 }
 0x18c   : > { %v886_v39 = vmul.f32 %v879_v27, %v872_v37  ;;  %v887_v40 = vmul.f32 %v883_v28, %v871_v36  ;;  %1554 = vmatprep.subr.bf16.mxu0 %v1553_v34  ;;  %1588 = vmatprep.subr.bf16.mxu1 %v1553_v34 }
 0x18d   : > { %v891_v43 = vpop.permute.xlu0 %890  ;;  %1556 = vmatpush1.bf16.msra.mxu0 %v1555_v35  ;;  %1597 = vmatpush1.bf16.msra.mxu1 %v1555_v35 }
 0x18e   : > { %v893_v44 = vpop.permute.xlu1 %892  ;;  %v1557_v45 = vpack.c.bf16 %v887_v40, %v864_v26  ;;  %v1559_v46 = vpack.c.bf16 %v886_v39, %v863_v25 }
 0x18f   : > { %v895_v7 = vsel %vm894_vm3, %v891_v43, %v893_v44  ;;  %v896_v47 = vsel %vm894_vm3, %v893_v44, %v891_v43 }
 0x190   : > { %v910_v49 = vmul.f32 %v903_v38, %v896_v47  ;;  %v911_v8 = vmul.f32 %v907_v41, %v895_v7  ;;  %1558 = vmatprep.subr.bf16.mxu0 %v1557_v45  ;;  %1589 = vmatprep.subr.bf16.mxu1 %v1557_v45  ;;  %v1532_v38 = vld [vmem:[%s2148_s1 + $0x20] ss:$8 sm:$0x3] }
 0x191   : > { %v921_v50 = vpop.permute.xlu0 %920  ;;  %1560 = vmatpush1.bf16.msra.mxu0 %v1559_v46  ;;  %1598 = vmatpush1.bf16.msra.mxu1 %v1559_v46  ;;  %v1073_v46 = vrot.slane %v1532_v38, %v1771_v13  ;;  %v1077_v7 = vrot.slane %v1532_v38, %v1773_v14 }
 0x192   : > { %v914_v52 = vrot.slane %v910_v49, 4  ;;  %v915_v53 = vrot.slane %v911_v8, 4  ;;  %v923_v56 = vpop.permute.xlu1 %922 }
 0x193   : > { %v925_v57 = vsel %vm924_vm4, %v921_v50, %v923_v56  ;;  %v926_v58 = vsel %vm924_vm4, %v923_v56, %v921_v50  ;;  %v1534_v56 = vld [vmem:[%s2148_s1 + $0x22] ss:$8 sm:$0x3] }
 0x194   : > { %918 = vst [vmem:[#allocation3 + $0x60] sm:$0xf] %v914_v52  ;;  %919 = vst [vmem:[#allocation3 + $0x68] sm:$0xf] %v915_v53  ;;  %v940_v59 = vmul.f32 %v933_v48, %v926_v58  ;;  %v941_v60 = vmul.f32 %v937_v1, %v925_v57 }
 0x195   : > { %v945_v63 = vpop.permute.xlu0 %944  ;;  %v1533_v48 = vld [vmem:[%s2148_s1 + $0x21] ss:$8 sm:$0x3] }
 0x196   : > { %942 = vst [vmem:[#allocation3 + $0x60] sm:$0xf0] %v940_v59  ;;  %943 = vst [vmem:[#allocation3 + $0x68] sm:$0xf0] %v941_v60  ;;  %v947_v2 = vpop.permute.xlu1 %946  ;;  %v1096_v51 = vrot.slane %v1533_v48, %v1771_v13  ;;  %v1100_v52 = vrot.slane %v1533_v48, %v1773_v14 }
 0x197   : > { %v948_v3 = vsel %vm315_vm7, %v945_v63, %v947_v2  ;;  %v949_v4 = vsel %vm315_vm7, %v947_v2, %v945_v63  ;;  %v1123_v63 = vrot.slane %v1534_v56, %v1773_v14  ;;  %vm1134_vm7 = vcmp.lt.s32.totalorder %v1769_v12, 110 }
 0x198   : > { %v963_v5 = vmul.f32 %v956_v61, %v949_v4  ;;  %v964_v6 = vmul.f32 %v960_v62, %v948_v3  ;;  %v1119_v62 = vrot.slane %v1534_v56, %v1771_v13 }
 0x199   : > { %v985_v11 = vpop.permute.xlu0 %984 }
 0x19a   : > { %v987_v16 = vpop.permute.xlu1 %986 }
 0x19b   : > { %v988_v17 = vsel %vm342_vm8, %v985_v11, %v987_v16  ;;  %v989_v18 = vsel %vm342_vm8, %v987_v16, %v985_v11  ;;  %vm1188_vm8 = vcmp.lt.s32.totalorder %v1769_v12, 97 }
 0x19c   : > { %v1003_v19 = vmul.f32 %v996_v9, %v988_v17  ;;  %v1004_v20 = vmul.f32 %v1000_v10, %v989_v18  ;;  %v1147_v18 = vrot.slane %v1535_v0, %v1773_v14 }
 0x19d   : > { %v1008_v24 = vpop.permute.xlu0 %1007  ;;  %v1314_v25 = vld [vmem:[#allocation3 + $0x68] sm:$0xff]  ;;  %v1313_v26 = vld [vmem:[#allocation3 + $0x60] sm:$0xff] }
 0x19e   : > { %v1010_v27 = vpop.permute.xlu1 %1009  ;;  %v1561_v28 = vpack.c.bf16 %v964_v6, %v1314_v25  ;;  %v1563_v29 = vpack.c.bf16 %v963_v5, %v1313_v26  ;;  %v1565_v36 = vpack.c.bf16 %v1004_v20, %v1887_v55  ;;  %v1567_v44 = vpack.c.bf16 %v1003_v19, %v1883_v54  ;;  %v1537_v19 = vld [vmem:[%s2148_s1 + $0x25] ss:$8 sm:$0x3] }
 0x19f   : > { %v1012_v30 = vsel %vm1011_vm5, %v1008_v24, %v1010_v27  ;;  %v1013_v31 = vsel %vm1011_vm5, %v1010_v27, %v1008_v24  ;;  %v1197_v26 = vrot.slane %v1537_v19, %v1771_v13 }
 0x1a0   : > { %v1027_v34 = vmul.f32 %v1020_v21, %v1012_v30  ;;  %v1028_v35 = vmul.f32 %v1024_v22, %v1013_v31  ;;  %1562 = vmatprep.subr.bf16.mxu0 %v1561_v28  ;;  %1590 = vmatprep.subr.bf16.mxu1 %v1561_v28  ;;  %v1536_v31 = vld [vmem:[%s2148_s1 + $0x24] ss:$8 sm:$0x3] }
 0x1a1   : > { %v1038_v37 = vpop.permute.xlu0 %1037  ;;  %1564 = vmatpush1.bf16.msra.mxu0 %v1563_v29  ;;  %1599 = vmatpush1.bf16.msra.mxu1 %v1563_v29  ;;  %v1201_v29 = vrot.slane %v1537_v19, %v1773_v14 }
 0x1a2   : > { %v1031_v39 = vrot.slane %v1027_v34, 4  ;;  %v1032_v40 = vrot.slane %v1028_v35, 4  ;;  %v1040_v41 = vpop.permute.xlu1 %1039  ;;  %1566 = vmatprep.subr.bf16.mxu0 %v1565_v36  ;;  %1591 = vmatprep.subr.bf16.mxu1 %v1565_v36 }
 0x1a3   : > { %v1042_v42 = vsel %vm1041_vm6, %v1038_v37, %v1040_v41  ;;  %v1043_v43 = vsel %vm1041_vm6, %v1040_v41, %v1038_v37  ;;  %v637_v41 = vpop.f32.mrb[0].mxu1 }
 0x1a4   : > { %1035 = vst [vmem:[#allocation3 + $0xa0] sm:$0xf] %v1031_v39  ;;  %1036 = vst [vmem:[#allocation3 + $0xa8] sm:$0xf] %v1032_v40  ;;  %v1057_v45 = vmul.f32 %v1050_v32, %v1042_v42  ;;  %v1058_v55 = vmul.f32 %v1054_v33, %v1043_v43  ;;  %v1173_v39 = vrot.slane %v1536_v31, %v1771_v13 }
 0x1a5   : > { %v1062_v47 = vpop.permute.xlu0 %1061  ;;  %1568 = vmatpush1.bf16.msra.mxu0 %v1567_v44  ;;  %1600 = vmatpush1.bf16.msra.mxu1 %v1567_v44  ;;  %v1177_v40 = vrot.slane %v1536_v31, %v1773_v14  ;;  %v1538_v43 = vld [vmem:[%s2148_s1 + $0x26] ss:$8 sm:$0x3]  ;;  %v638_v44 = vpop.f32.mrb[1].mxu1  ;;  %v1299_v31 = vld [vmem:[%s2151_s4 + $0x10] sm:$0xff] }
 0x1a6   : > { %1059 = vst [vmem:[#allocation3 + $0xa0] sm:$0xf0] %v1057_v45  ;;  %1060 = vst [vmem:[#allocation3 + $0xa8] sm:$0xf0] %v1058_v55  ;;  %v1064_v49 = vpop.permute.xlu1 %1063 }
 0x1a7   : > { %v1065_v54 = vsel %vm369_vm9, %v1062_v47, %v1064_v49  ;;  %v1066_v8 = vsel %vm369_vm9, %v1064_v49, %v1062_v47  ;;  %vm1164_vm9 = vcmp.lt.s32.totalorder %v1769_v12, 98 }
 0x1a8   : > { %v1080_v1 = vmul.f32 %v1073_v46, %v1065_v54  ;;  %v1081_v50 = vmul.f32 %v1077_v7, %v1066_v8  ;;  %v1227_v54 = vrot.slane %v1538_v43, %v1771_v13  ;;  %v1231_v8 = vrot.slane %v1538_v43, %v1773_v14 }
 0x1a9   : > { %v1085_v53 = vpop.permute.xlu0 %1084 }
 0x1aa   : > { %v1087_v57 = vpop.permute.xlu1 %1086 }
 0x1ab   : > { %v1088_v58 = vsel %vm396_vm10, %v1085_v53, %v1087_v57  ;;  %v1089_v59 = vsel %vm396_vm10, %v1087_v57, %v1085_v53  ;;  %vm1218_vm10 = vcmp.lt.s32.totalorder %v1769_v12, 96 }
 0x1ac   : > { %v1103_v60 = vmul.f32 %v1096_v51, %v1088_v58  ;;  %v1104_v61 = vmul.f32 %v1100_v52, %v1089_v59  ;;  %v1539_v51 = vld [vmem:[%s2148_s1 + $0x27] ss:$8 sm:$0x3] }
 0x1ad   : > { %v1108_v2 = vpop.permute.xlu0 %1107  ;;  %v1322_v3 = vld [vmem:[#allocation3 + $0xa8] sm:$0xff]  ;;  %v1321_v4 = vld [vmem:[#allocation3 + $0xa0] sm:$0xff] }
 0x1ae   : > { %v1110_v5 = vpop.permute.xlu1 %1109  ;;  %v1569_v6 = vpack.c.bf16 %v1081_v50, %v1322_v3  ;;  %v1571_v9 = vpack.c.bf16 %v1080_v1, %v1321_v4  ;;  %v641_v1 = vpop.f32.mrb[2].mxu1 }
 0x1af   : > { %v1111_v10 = vsel %vm423_vm11, %v1108_v2, %v1110_v5  ;;  %v1112_v11 = vsel %vm423_vm11, %v1110_v5, %v1108_v2  ;;  %v642_v52 = vpop.f32.mrb[3].mxu1  ;;  %vm1242_vm11 = vcmp.lt.s32.totalorder %v1769_v12, 95 }
 0x1b0   : > { %v1126_v16 = vmul.f32 %v1119_v62, %v1111_v10  ;;  %v1127_v17 = vmul.f32 %v1123_v63, %v1112_v11  ;;  %1570 = vmatprep.subr.bf16.mxu0 %v1569_v6  ;;  %1592 = vmatprep.subr.bf16.mxu1 %v1569_v6  ;;  %v1540_v63 = vld [vmem:[%s2148_s1 + $0x30] ss:$8 sm:$0x3] }
 0x1b1   : > { %v1131_v20 = vpop.permute.xlu0 %1130  ;;  %1572 = vmatpush1.bf16.msra.mxu0 %v1571_v9  ;;  %1601 = vmatpush1.bf16.msra.mxu1 %v1571_v9  ;;  %v1281_v6 = vrot.slane %v1540_v63, %v1771_v13  ;;  %v1285_v9 = vrot.slane %v1540_v63, %v1773_v14 }
 0x1b2   : > { %v1133_v21 = vpop.permute.xlu1 %1132  ;;  %v1573_v22 = vpack.c.bf16 %v1127_v17, %v1104_v61  ;;  %v1575_v23 = vpack.c.bf16 %v1126_v16, %v1103_v60  ;;  %v1251_v60 = vrot.slane %v1539_v51, %v1771_v13  ;;  %v1255_v61 = vrot.slane %v1539_v51, %v1773_v14  ;;  %v1336_v14 = vld [vmem:[#allocation3 + $0x118] sm:$0x1] }
 0x1b3   : > { %v1135_v24 = vsel %vm1134_vm7, %v1131_v20, %v1133_v21  ;;  %v1136_v25 = vsel %vm1134_vm7, %v1133_v21, %v1131_v20 }
 0x1b4   : > { %v1150_v27 = vmul.f32 %v1143_v15, %v1135_v24  ;;  %v1151_v28 = vmul.f32 %v1147_v18, %v1136_v25  ;;  %1574 = vmatprep.subr.bf16.mxu0 %v1573_v22  ;;  %1593 = vmatprep.subr.bf16.mxu1 %v1573_v22  ;;  %v1335_v25 = vld [vmem:[#allocation3 + $0x110] sm:$0x1] }
 0x1b5   : > { %v1185_v30 = vpop.permute.xlu0 %1184  ;;  %1576 = vmatpush1.bf16.msra.mxu0 %v1575_v23  ;;  %1602 = vmatpush1.bf16.msra.mxu1 %v1575_v23 }
 0x1b6   : > { %v1154_v32 = vrot.slane %v1150_v27, 4  ;;  %v1155_v33 = vrot.slane %v1151_v28, 4  ;;  %v1187_v34 = vpop.permute.xlu1 %1186 }
 0x1b7   : > { %v1189_v35 = vsel %vm1188_vm8, %v1185_v30, %v1187_v34  ;;  %v1190_v36 = vsel %vm1188_vm8, %v1187_v34, %v1185_v30  ;;  %v1297_v30 = vld [vmem:[%s2151_s4] sm:$0xff] }
 0x1b8   : > { %1158 = vst [vmem:[#allocation3 + $0xe0] sm:$0xf] %v1154_v32  ;;  %1159 = vst [vmem:[#allocation3 + $0xe8] sm:$0xf] %v1155_v33  ;;  %v1204_v37 = vmul.f32 %v1197_v26, %v1189_v35  ;;  %v1205_v38 = vmul.f32 %v1201_v29, %v1190_v36  ;;  %v568_v32 = vpop.f32.mrb[4].mxu0  ;;  %v645_v33 = vpop.f32.mrb[4].mxu1 }
 0x1b9   : > { %v1161_v42 = vpop.permute.xlu0 %1160  ;;  %v654_v34 = vmax.f32 %v645_v33, 0.0  ;;  %v569_v35 = vpop.f32.mrb[5].mxu0 }
 0x1ba   : > { %v1208_v45 = vrot.slane %v1204_v37, 4  ;;  %v1209_v55 = vrot.slane %v1205_v38, 4  ;;  %v1163_v46 = vpop.permute.xlu1 %1162  ;;  %v647_v36 = vpop.f32.mrb[5].mxu1 }
 0x1bb   : > { %v1165_v7 = vsel %vm1164_vm9, %v1161_v42, %v1163_v46  ;;  %v1166_v47 = vsel %vm1164_vm9, %v1163_v46, %v1161_v42  ;;  %v655_v37 = vmax.f32 %v647_v36, 0.0  ;;  %658 = vst [vmem:[%s1868_s15 + $0x30] sm:$0xff] %v654_v34 }
 0x1bc   : > { %1212 = vst [vmem:[#allocation3 + $0xf0] sm:$0xf] %v1208_v45  ;;  %1213 = vst [vmem:[#allocation3 + $0xf8] sm:$0xf] %v1209_v55  ;;  %v1180_v48 = vmul.f32 %v1173_v39, %v1165_v7  ;;  %v1181_v49 = vmul.f32 %v1177_v40, %v1166_v47 }
 0x1bd   : > { %v1215_v50 = vpop.permute.xlu0 %1214  ;;  %659 = vst [vmem:[%s1868_s15 + $0x38] sm:$0xff] %v655_v37 }
 0x1be   : > { %1182 = vst [vmem:[#allocation3 + $0xe0] sm:$0xf0] %v1180_v48  ;;  %1183 = vst [vmem:[#allocation3 + $0xe8] sm:$0xf0] %v1181_v49  ;;  %v1217_v53 = vpop.permute.xlu1 %1216 }
 0x1bf   : > { %v1219_v56 = vsel %vm1218_vm10, %v1215_v50, %v1217_v53  ;;  %v1220_v57 = vsel %vm1218_vm10, %v1217_v53, %v1215_v50 }
 0x1c0   : > { %v1234_v58 = vmul.f32 %v1227_v54, %v1219_v56  ;;  %v1235_v59 = vmul.f32 %v1231_v8, %v1220_v57 }
 0x1c1   : > { %v1239_v62 = vpop.permute.xlu0 %1238 }
 0x1c2   : > { %1236 = vst [vmem:[#allocation3 + $0xf0] sm:$0xf0] %v1234_v58  ;;  %1237 = vst [vmem:[#allocation3 + $0xf8] sm:$0xf0] %v1235_v59  ;;  %v1241_v0 = vpop.permute.xlu1 %1240 }
 0x1c3   : > { %v1243_v2 = vsel %vm1242_vm11, %v1239_v62, %v1241_v0  ;;  %v1244_v3 = vsel %vm1242_vm11, %v1241_v0, %v1239_v62 }
 0x1c4   : > { %v1258_v4 = vmul.f32 %v1251_v60, %v1243_v2  ;;  %v1259_v5 = vmul.f32 %v1255_v61, %v1244_v3 }
 0x1c5   : > { %v1269_v10 = vpop.permute.xlu0 %1268  ;;  %v1330_v21 = vld [vmem:[#allocation3 + $0xe8] sm:$0xff]  ;;  %v1329_v23 = vld [vmem:[#allocation3 + $0xe0] sm:$0xff] }
 0x1c6   : > { %v1262_v11 = vrot.slane %v1258_v4, 4  ;;  %v1263_v15 = vrot.slane %v1259_v5, 4  ;;  %v1271_v16 = vpop.permute.xlu1 %1270 }
 0x1c7   : > { %v1273_v17 = vsel %vm1272_vm12, %v1269_v10, %v1271_v16  ;;  %v1274_v18 = vsel %vm1272_vm12, %v1271_v16, %v1269_v10 }
 0x1c8   : > { %1266 = vst [vmem:[#allocation3 + $0x100] sm:$0xf] %v1262_v11  ;;  %1267 = vst [vmem:[#allocation3 + $0x108] sm:$0xf] %v1263_v15  ;;  %v1288_v19 = vmul.f32 %v1281_v6, %v1273_v17  ;;  %v1289_v20 = vmul.f32 %v1285_v9, %v1274_v18 }
 0x1c9   : > { %v1332_v22 = vld [vmem:[#allocation3 + $0xf8] sm:$0xff]  ;;  %v1331_v12 = vld [vmem:[#allocation3 + $0xf0] sm:$0xff] }
 0x1ca   : > { %1290 = vst [vmem:[#allocation3 + $0x100] sm:$0xf0] %v1288_v19  ;;  %1291 = vst [vmem:[#allocation3 + $0x108] sm:$0xf0] %v1289_v20  ;;  %v1577_v24 = vpack.c.bf16 %v1332_v22, %v1330_v21  ;;  %v1579_v13 = vpack.c.bf16 %v1331_v12, %v1329_v23 }
 0x1cc   : > { %1578 = vmatprep.subr.bf16.mxu0 %v1577_v24  ;;  %1594 = vmatprep.subr.bf16.mxu1 %v1577_v24 }
 0x1cd   : > { %1580 = vmatpush1.bf16.msra.mxu0 %v1579_v13  ;;  %1603 = vmatpush1.bf16.msra.mxu1 %v1579_v13 }
 0x1d1   : > { %v1334_v26 = vld [vmem:[#allocation3 + $0x108] sm:$0xff]  ;;  %v1333_v27 = vld [vmem:[#allocation3 + $0x100] sm:$0xff] }
 0x1d2   : > { %v1581_v28 = vpack.c.bf16 %v1336_v14, %v1334_v26  ;;  %v1584_v29 = vpack.c.bf16 %v1335_v25, %v1333_v27 }
 0x1d4   : > { %1583 = vmatprep.subr.msk.bf16.mxu0 %vm1582_vm15, %v1581_v28  ;;  %1595 = vmatprep.subr.msk.bf16.mxu1 %vm1582_vm15, %v1581_v28 }
 0x1d5   : > { %1586 = vmatpush1.bf16.msk.msra.mxu0 %vm1582_vm15, %v1584_v29  ;;  %1604 = vmatpush1.bf16.msk.msra.mxu1 %vm1582_vm15, %v1584_v29 }
 0x1d8   : > { %1416 = vmatmul.mubr.f32.vlgmr.msra.gmra.mrb[6].mxu0 %v1297_v30  ;;  %1422 = vmatmul.mubr.f32.vlgmr.msra.gmra.mrb[6].mxu1 %v1299_v31 }
 0x2ab   : > { %v1417_v38 = vpop.f32.mrb[6].mxu0  ;;  %v1423_v39 = vpop.f32.mrb[6].mxu1 }
 0x2ac   : > { %v1428_v40 = vmax.f32 %v1417_v38, 0.0  ;;  %v1430_v41 = vmax.f32 %v1423_v39, 0.0  ;;  %v1419_v42 = vpop.f32.mrb[7].mxu0  ;;  %v1425_v43 = vpop.f32.mrb[7].mxu1 }
 0x2ad   : > { %v1429_v44 = vmax.f32 %v1419_v42, 0.0  ;;  %v1431_v45 = vmax.f32 %v1425_v43, 0.0 }
 0x2ae   : > { %1432 = vst [vmem:[%s1868_s15 + $0x10] sm:$0xff] %v1428_v40  ;;  %1434 = vst [vmem:[%s1868_s15 + $0x20] sm:$0xff] %v1430_v41 }
 0x2af   : > { %1433 = vst [vmem:[%s1868_s15 + $0x18] sm:$0xff] %v1429_v44  ;;  %1435 = vst [vmem:[%s1868_s15 + $0x28] sm:$0xff] %v1431_v45 }
 0x2b0 PF: > { %s15_s18 = sadd.s32 1, %s1647_s18  }
 0x2b1   : > { %p12_p4 = scmp.ge.s32.totalorder %s15_s18, 4  }
 0x2b3   :  { %14 = sbr.rel (!%p12_p4) target bundleno = 1 (0x1), region = 103 }

</bundles_post_ra>
